<compile_context>
chip_gen: v7x
topology: tpu7x:2x2x1
jax: 0.10.0
libtpu: 0.0.40
codegen_flags: <defaults>
</compile_context>

<pallas_src>
import functools

import jax
import jax.numpy as jnp
from jax.experimental import pallas as pl
from jax.experimental.pallas import tpu as pltpu

IN_FEATURES = 4096
HIDDEN = 128
NUM_CLASSES = 40
PADDED_CLASSES = 128   # lane-dense classifier output; sliced to 40 in wrapper


def _round_up(x, m):
    return ((x + m - 1) // m) * m


def rnn_fc_kernel(x_ref, w0_ref, b0_ref, w1_ref, b1_ref, wfc_ref, bfc_ref,
                  out_ref):
    # Layer-0 RNN cell (seq_len == 1, h0 == 0): tanh(x @ W0 + b0).
    # x arrives f32; cast to bf16 on the VPU, accumulate in f32 on the MXU.
    x = x_ref[...].astype(jnp.bfloat16)
    h1 = jnp.tanh(
        jnp.dot(x, w0_ref[...], preferred_element_type=jnp.float32)
        + b0_ref[...]
    )
    # Layer-1 RNN cell (h0 == 0): tanh(h1 @ W1 + b1).
    h2 = jnp.tanh(
        jnp.dot(h1.astype(jnp.bfloat16), w1_ref[...],
                preferred_element_type=jnp.float32)
        + b1_ref[...]
    )
    # Final linear classifier (lane-padded to 128 columns): h2 @ Wfc + bfc.
    out_ref[...] = (
        jnp.dot(h2.astype(jnp.bfloat16), wfc_ref[...],
                preferred_element_type=jnp.float32)
        + bfc_ref[...]
    )


def _pick_tm(B):
    if B >= 256:
        return 128
    if B >= 32:
        # Ensure at least 2 batch tiles so both TensorCores get work on
        # megacore parts; keep rows a multiple of 16 for bf16 packing.
        return min(128, _round_up(pl.cdiv(B, 2), 16))
    return max(16, _round_up(B, 16))


@jax.jit
def rnn_forward(x_nchw, params):
    """x_nchw: (B, 1, 64, 64) float32. Returns (B, 40) float32 logits."""
    B = x_nchw.shape[0]
    x = x_nchw.reshape(B, -1)
    assert x.shape[1] == IN_FEATURES

    w0, b0, w1, b1, wfc, bfc = params   # pre-transposed / padded (make_params)

    tm = _pick_tm(B)
    B_pad = _round_up(B, tm)
    if B_pad != B:
        x = jnp.pad(x, ((0, B_pad - B), (0, 0)))

    grid = (B_pad // tm,)

    out_padded = pl.pallas_call(
        rnn_fc_kernel,
        out_shape=jax.ShapeDtypeStruct((B_pad, PADDED_CLASSES), jnp.float32),
        grid=grid,
        in_specs=[
            pl.BlockSpec((tm, IN_FEATURES), lambda m: (m, 0)),          # x  (f32)
            pl.BlockSpec((IN_FEATURES, HIDDEN), lambda m: (0, 0)),      # w0 (bf16)
            pl.BlockSpec((1, HIDDEN), lambda m: (0, 0)),                # b0 (f32)
            pl.BlockSpec((HIDDEN, HIDDEN), lambda m: (0, 0)),           # w1 (bf16)
            pl.BlockSpec((1, HIDDEN), lambda m: (0, 0)),                # b1 (f32)
            pl.BlockSpec((HIDDEN, PADDED_CLASSES), lambda m: (0, 0)),   # wfc (bf16)
            pl.BlockSpec((1, PADDED_CLASSES), lambda m: (0, 0)),        # bfc (f32)
        ],
        out_specs=pl.BlockSpec((tm, PADDED_CLASSES), lambda m: (m, 0)),
        compiler_params=pltpu.CompilerParams(
            dimension_semantics=("parallel",),
        ),
    )(x, w0, b0, w1, b1, wfc, bfc)

    return out_padded[:B, :NUM_CLASSES]


def make_params(key):
    """Deterministic PyTorch-style uniform init (k = 1/sqrt(hidden_size))."""
    keys = jax.random.split(key, 10)
    k_rnn = 1.0 / jnp.sqrt(jnp.float32(HIDDEN))
    k_fc = 1.0 / jnp.sqrt(jnp.float32(HIDDEN))

    def u(k, shape, bound):
        return jax.random.uniform(k, shape, jnp.float32, -bound, bound)

    # nn.RNN layer 0
    w_ih_l0 = u(keys[0], (HIDDEN, IN_FEATURES), k_rnn)
    b_ih_l0 = u(keys[1], (HIDDEN,), k_rnn)
    b_hh_l0 = u(keys[2], (HIDDEN,), k_rnn)
    # nn.RNN layer 1
    w_ih_l1 = u(keys[3], (HIDDEN, HIDDEN), k_rnn)
    b_ih_l1 = u(keys[4], (HIDDEN,), k_rnn)
    b_hh_l1 = u(keys[5], (HIDDEN,), k_rnn)
    # (W_hh_l0 / W_hh_l1 multiply zero hidden states for seq_len == 1 -> unused)
    # nn.Linear(128, 40)
    w_fc = u(keys[6], (NUM_CLASSES, HIDDEN), k_fc)
    b_fc = u(keys[7], (NUM_CLASSES,), k_fc)

    # Pre-transpose for row-major matmuls; biases as (1, N) rows (kept f32).
    w0 = w_ih_l0.T.astype(jnp.bfloat16)                 # (4096, 128) bf16
    b0 = (b_ih_l0 + b_hh_l0).reshape(1, HIDDEN)          # (1, 128) f32
    w1 = w_ih_l1.T.astype(jnp.bfloat16)                  # (128, 128) bf16
    b1 = (b_ih_l1 + b_hh_l1).reshape(1, HIDDEN)          # (1, 128) f32
    # Lane-pad the classifier to 128 output columns (zeros beyond class 40).
    wfc = (jnp.zeros((HIDDEN, PADDED_CLASSES), jnp.float32)
           .at[:, :NUM_CLASSES].set(w_fc.T)).astype(jnp.bfloat16)
    bfc = jnp.zeros((1, PADDED_CLASSES), jnp.float32).at[:, :NUM_CLASSES].set(b_fc)
    return (w0, b0, w1, b1, wfc, bfc)


def reference_forward(x_nchw, params):
    """Pure-JAX reference mirroring the kernel's bf16 operand rounding."""
    w0, b0, w1, b1, wfc, bfc = params
    x = x_nchw.reshape(x_nchw.shape[0], -1)
    x = x.astype(jnp.bfloat16).astype(jnp.float32)
    h1 = jnp.tanh(x @ w0.astype(jnp.float32) + b0)
    h1 = h1.astype(jnp.bfloat16).astype(jnp.float32)
    h2 = jnp.tanh(h1 @ w1.astype(jnp.float32) + b1)
    h2 = h2.astype(jnp.bfloat16).astype(jnp.float32)
    return (h2 @ wfc.astype(jnp.float32) + bfc)[:, :NUM_CLASSES]


if __name__ == "__main__":
    key = jax.random.PRNGKey(0)
    k_x, k_p = jax.random.split(key)

    B = 2
    # Face images: NCHW (B, 1, 64, 64) -> 1*64*64 = 4096 features per sample.
    x = jax.random.normal(k_x, (B, 1, 64, 64), dtype=jnp.float32)
    params = make_params(k_p)

    out = rnn_forward(x, params)
    out = jax.block_until_ready(out)

    ref = reference_forward(x, params)
    assert out.shape == (B, NUM_CLASSES), out.shape
    assert jnp.allclose(out, ref, atol=5e-3, rtol=5e-3), float(
        jnp.max(jnp.abs(out - ref))
    )
    print("KERNEL_OK")
</pallas_src>

<mosaic_0001>
module attributes {stable_mosaic.version = 11 : i64} {
  func.func @rnn_fc_kernel(%arg0: i32, %arg1: memref<16x4096xf32, #tpu.memory_space<vmem>>, %arg2: memref<4096x128xbf16, #tpu.memory_space<vmem>>, %arg3: memref<1x128xf32, #tpu.memory_space<vmem>>, %arg4: memref<128x128xbf16, #tpu.memory_space<vmem>>, %arg5: memref<1x128xf32, #tpu.memory_space<vmem>>, %arg6: memref<128x128xbf16, #tpu.memory_space<vmem>>, %arg7: memref<1x128xf32, #tpu.memory_space<vmem>>, %arg8: memref<16x128xf32, #tpu.memory_space<vmem>>) attributes {dimension_semantics = [#tpu.dimension_semantics<parallel>], iteration_bounds = array<i64: 1>, scalar_prefetch = 0 : i64, scratch_operands = 0 : i64, tpu.core_type = #tpu.core_type<tc>, window_params = [{transform_indices = @transform_0, window_bounds = array<i64: 16, 4096>}, {pipeline_mode = #tpu.pipeline_mode<synchronous>, transform_indices = @transform_1, window_bounds = array<i64: 4096, 128>}, {pipeline_mode = #tpu.pipeline_mode<synchronous>, transform_indices = @transform_2, window_bounds = array<i64: 1, 128>}, {pipeline_mode = #tpu.pipeline_mode<synchronous>, transform_indices = @transform_3, window_bounds = array<i64: 128, 128>}, {pipeline_mode = #tpu.pipeline_mode<synchronous>, transform_indices = @transform_4, window_bounds = array<i64: 1, 128>}, {pipeline_mode = #tpu.pipeline_mode<synchronous>, transform_indices = @transform_5, window_bounds = array<i64: 128, 128>}, {pipeline_mode = #tpu.pipeline_mode<synchronous>, transform_indices = @transform_6, window_bounds = array<i64: 1, 128>}, {transform_indices = @transform_7, window_bounds = array<i64: 16, 128>}]} {
    %c0 = arith.constant 0 : index
    %c0_0 = arith.constant 0 : index
    %0 = vector.load %arg1[%c0, %c0_0] : memref<16x4096xf32, #tpu.memory_space<vmem>>, vector<16x4096xf32>
    %1 = arith.truncf %0 : vector<16x4096xf32> to vector<16x4096xbf16>
    %c0_1 = arith.constant 0 : index
    %c0_2 = arith.constant 0 : index
    %2 = vector.load %arg2[%c0_1, %c0_2] : memref<4096x128xbf16, #tpu.memory_space<vmem>>, vector<4096x128xbf16>
    %cst = arith.constant dense<0.000000e+00> : vector<16x128xf32>
    %3 = tpu.matmul %1, %2, %cst {dimension_numbers = #tpu.dot_dimension_numbers<[1], [0], [0], [1], [0, 0, 1, 1], [], []>} : vector<16x4096xbf16>, vector<4096x128xbf16>, vector<16x128xf32> -> vector<16x128xf32>
    %c0_3 = arith.constant 0 : index
    %c0_4 = arith.constant 0 : index
    %4 = vector.load %arg3[%c0_3, %c0_4] : memref<1x128xf32, #tpu.memory_space<vmem>>, vector<1x128xf32>
    %5 = vector.broadcast %4 : vector<1x128xf32> to vector<16x128xf32>
    %6 = arith.addf %3, %5 : vector<16x128xf32>
    %7 = math.tanh %6 : vector<16x128xf32>
    %8 = arith.truncf %7 : vector<16x128xf32> to vector<16x128xbf16>
    %c0_5 = arith.constant 0 : index
    %c0_6 = arith.constant 0 : index
    %9 = vector.load %arg4[%c0_5, %c0_6] : memref<128x128xbf16, #tpu.memory_space<vmem>>, vector<128x128xbf16>
    %cst_7 = arith.constant dense<0.000000e+00> : vector<16x128xf32>
    %10 = tpu.matmul %8, %9, %cst_7 {dimension_numbers = #tpu.dot_dimension_numbers<[1], [0], [0], [1], [0, 0, 1, 1], [], []>} : vector<16x128xbf16>, vector<128x128xbf16>, vector<16x128xf32> -> vector<16x128xf32>
    %c0_8 = arith.constant 0 : index
    %c0_9 = arith.constant 0 : index
    %11 = vector.load %arg5[%c0_8, %c0_9] : memref<1x128xf32, #tpu.memory_space<vmem>>, vector<1x128xf32>
    %12 = vector.broadcast %11 : vector<1x128xf32> to vector<16x128xf32>
    %13 = arith.addf %10, %12 : vector<16x128xf32>
    %14 = math.tanh %13 : vector<16x128xf32>
    %15 = arith.truncf %14 : vector<16x128xf32> to vector<16x128xbf16>
    %c0_10 = arith.constant 0 : index
    %c0_11 = arith.constant 0 : index
    %16 = vector.load %arg6[%c0_10, %c0_11] : memref<128x128xbf16, #tpu.memory_space<vmem>>, vector<128x128xbf16>
    %cst_12 = arith.constant dense<0.000000e+00> : vector<16x128xf32>
    %17 = tpu.matmul %15, %16, %cst_12 {dimension_numbers = #tpu.dot_dimension_numbers<[1], [0], [0], [1], [0, 0, 1, 1], [], []>} : vector<16x128xbf16>, vector<128x128xbf16>, vector<16x128xf32> -> vector<16x128xf32>
    %c0_13 = arith.constant 0 : index
    %c0_14 = arith.constant 0 : index
    %18 = vector.load %arg7[%c0_13, %c0_14] : memref<1x128xf32, #tpu.memory_space<vmem>>, vector<1x128xf32>
    %19 = vector.broadcast %18 : vector<1x128xf32> to vector<16x128xf32>
    %20 = arith.addf %17, %19 : vector<16x128xf32>
    %c0_15 = arith.constant 0 : index
    %c0_16 = arith.constant 0 : index
    %21 = vector.load %arg8[%c0_15, %c0_16] : memref<16x128xf32, #tpu.memory_space<vmem>>, vector<16x128xf32>
    tpu.vector_store %arg8[%c0_15, %c0_16], %20 {strides = array<i32>} : memref<16x128xf32, #tpu.memory_space<vmem>>, vector<16x128xf32>,
    return
  }
  func.func @transform_0(%arg0: i32) -> (i32, i32) {
    %c0_i32 = arith.constant 0 : i32
    %c0_i32_0 = arith.constant 0 : i32
    return %arg0, %c0_i32 : i32, i32
  }
  func.func @transform_1(%arg0: i32) -> (i32, i32) {
    %c0_i32 = arith.constant 0 : i32
    %c0_i32_0 = arith.constant 0 : i32
    %c0_i32_1 = arith.constant 0 : i32
    return %c0_i32, %c0_i32_0 : i32, i32
  }
  func.func @transform_2(%arg0: i32) -> (i32, i32) {
    %c0_i32 = arith.constant 0 : i32
    %c0_i32_0 = arith.constant 0 : i32
    %c0_i32_1 = arith.constant 0 : i32
    return %c0_i32, %c0_i32_0 : i32, i32
  }
  func.func @transform_3(%arg0: i32) -> (i32, i32) {
    %c0_i32 = arith.constant 0 : i32
    %c0_i32_0 = arith.constant 0 : i32
    %c0_i32_1 = arith.constant 0 : i32
    return %c0_i32, %c0_i32_0 : i32, i32
  }
  func.func @transform_4(%arg0: i32) -> (i32, i32) {
    %c0_i32 = arith.constant 0 : i32
    %c0_i32_0 = arith.constant 0 : i32
    %c0_i32_1 = arith.constant 0 : i32
    return %c0_i32, %c0_i32_0 : i32, i32
  }
  func.func @transform_5(%arg0: i32) -> (i32, i32) {
    %c0_i32 = arith.constant 0 : i32
    %c0_i32_0 = arith.constant 0 : i32
    %c0_i32_1 = arith.constant 0 : i32
    return %c0_i32, %c0_i32_0 : i32, i32
  }
  func.func @transform_6(%arg0: i32) -> (i32, i32) {
    %c0_i32 = arith.constant 0 : i32
    %c0_i32_0 = arith.constant 0 : i32
    %c0_i32_1 = arith.constant 0 : i32
    return %c0_i32, %c0_i32_0 : i32, i32
  }
  func.func @transform_7(%arg0: i32) -> (i32, i32) {
    %c0_i32 = arith.constant 0 : i32
    %c0_i32_0 = arith.constant 0 : i32
    return %arg0, %c0_i32 : i32, i32
  }
}

</mosaic_0001>

<bundles_post_ra>
// kernel: rnn_forward.1
= control target key start
LH: loop header
LB: loop body
LE: loop exit
PB: predicated region body
PF: predicated region fallthrough
CT: control target
= control target key end

     0   :  { %12 = vsyncpa [#allocation3], 0  ;;  %s4079_s24 = smov [#allocation2]   ;;  %s4409_s0 = inlined_call_operand.vmem [shape: f32[16,4096], index: 0, kind: input, shape index: {}]   ;;  %s4410_s1 = inlined_call_operand.hbm [shape: bf16[4096,128], index: 1, kind: input, shape index: {}]   ;;  %s4411_s2 = inlined_call_operand.vmem [shape: f32[1,128], index: 2, kind: input, shape index: {}]   ;;  %s4412_s3 = inlined_call_operand.vmem [shape: bf16[128,128], index: 3, kind: input, shape index: {}]   ;;  %s4413_s4 = inlined_call_operand.vmem [shape: f32[1,128], index: 4, kind: input, shape index: {}]   ;;  %s4414_s5 = inlined_call_operand.vmem [shape: bf16[128,128], index: 5, kind: input, shape index: {}]   ;;  %s4415_s6 = inlined_call_operand.vmem [shape: f32[1,128], index: 6, kind: input, shape index: {}]   ;;  %s4416_s7 = inlined_call_operand.vmem [shape: f32[16,128], index: 7, kind: output, shape index: {}]  }
   0x1   :  { %s20_s25 = sshll.u32 %s4079_s24, 4  ;;  %s4055_s28 = scalar_lea.hbm %s4410_s1, 32768  ;;  %s21_s25 = int_to_ptr.vmem [resolvable:$true] %s20_s25 }
   0x2   :  { %p4056_p0 = scmp.ne.s32.totalorder %s4410_s1, %s4055_s28  ;;  %p4059_p1 = scmp.lt.u32.totalorder %s4055_s28, %s4410_s1 }
   0x4   :  { %p4061_p2 = pnand %p4059_p1, %p4056_p0 }
   0x6   :  { %4064 = shalt.err (!%p4061_p2)
}
   0x7   :  { %s4065_s10 = scalar_lea.vmem %s21_s25, 32768  ;;  %p4070_p4 = scmp.lt.s32.totalorder %s21_s25, %s21_s25 }
   0x8   :  { %p4066_p3 = scmp.ne.s32.totalorder %s21_s25, %s4065_s10  ;;  %p4071_p5 = scmp.lt.s32.totalorder %s4065_s10, %s4065_s10 }
   0xa   :  { %p4072_p6 = por %p4071_p5, %p4070_p4 }
   0xc   :  { %p4073_p7 = pnand %p4072_p6, %p4066_p3 }
   0xe   :  { %4076 = shalt.err (!%p4073_p7)
}
   0xf   :  { %s4080_s11 = smov 64   ;;  %s4081_s12 = smov 4  }
  0x10   :  { %26 = dma.hbm_to_vmem [thread:$0]  %s4410_s1, 32768, %s21_s25, [#allocation3], %s4080_s11, %s4080_s11, %s4081_s12  }
  0x11   :  { %4077 = dma.done.wait [#allocation3], 32768  }
  0x12   :  { %4078 = vsyncadd [#allocation3], 4294934528  ;;  %v3775_v0 = vld [vmem:[#allocation2 + $0x40] sm:$0xff]   ;;  %v3779_v4 = vld [vmem:[#allocation2 + $0x48] sm:$0xff]   ;;  %vm4083_vm0 = vmmov 0  }
  0x13   :  { %v3776_v1 = vld [vmem:[#allocation2 + $0xc0] sm:$0xff]   ;;  %3360 = vmatprep.subr.bf16.mxu0 %v3775_v0  ;;  %v3780_v5 = vld [vmem:[#allocation2 + $0xc8] sm:$0xff]   ;;  %v3783_v8 = vld [vmem:[#allocation2 + $0x50] sm:$0xff]  }
  0x14   :  { %v3777_v2 = vld [vmem:[#allocation2] sm:$0xff]   ;;  %3382 = vmatprep.subr.bf16.mxu1 %v3776_v1  ;;  %v3781_v6 = vld [vmem:[#allocation2 + $0x8] sm:$0xff]   ;;  %v3784_v9 = vld [vmem:[#allocation2 + $0xd0] sm:$0xff]  }
  0x15   :  { %v3778_v3 = vld [vmem:[#allocation2 + $0x80] sm:$0xff]   ;;  %3361 = vmatpush3.bf16.msra.mxu0 %v3777_v2  ;;  %v3782_v7 = vld [vmem:[#allocation2 + $0x88] sm:$0xff]   ;;  %v3785_v10 = vld [vmem:[#allocation2 + $0x10] sm:$0xff]  }
  0x16   :  { %3383 = vmatpush3.bf16.msra.mxu1 %v3778_v3  ;;  %3362 = vmatprep.subr.bf16.mxu0 %v3779_v4  ;;  %v3786_v11 = vld [vmem:[#allocation2 + $0x90] sm:$0xff]   ;;  %v3787_v12 = vld [vmem:[#allocation2 + $0x58] sm:$0xff]   ;;  %v3791_v16 = vld [vmem:[#allocation2 + $0x60] sm:$0xff]  }
  0x17   :  { %3384 = vmatprep.subr.bf16.mxu1 %v3780_v5  ;;  %v3788_v13 = vld [vmem:[#allocation2 + $0xd8] sm:$0xff]   ;;  %v3792_v17 = vld [vmem:[#allocation2 + $0xe0] sm:$0xff]   ;;  %v3795_v20 = vld [vmem:[#allocation2 + $0x68] sm:$0xff]  }
  0x18   :  { %v3789_v14 = vld [vmem:[#allocation2 + $0x18] sm:$0xff]   ;;  %v3793_v18 = vld [vmem:[#allocation2 + $0x20] sm:$0xff]   ;;  %v3796_v21 = vld [vmem:[#allocation2 + $0xe8] sm:$0xff]  }
  0x19   :  { %3363 = vmatpush3.bf16.msra.mxu0 %v3781_v6  ;;  %v3790_v15 = vld [vmem:[#allocation2 + $0x98] sm:$0xff]   ;;  %v3794_v19 = vld [vmem:[#allocation2 + $0xa0] sm:$0xff]   ;;  %v3797_v22 = vld [vmem:[#allocation2 + $0x28] sm:$0xff]  }
  0x1a   :  { %3385 = vmatpush3.bf16.msra.mxu1 %v3782_v7  ;;  %3364 = vmatprep.subr.bf16.mxu0 %v3783_v8  ;;  %v3798_v23 = vld [vmem:[#allocation2 + $0xa8] sm:$0xff]   ;;  %v3799_v24 = vld [vmem:[#allocation2 + $0x70] sm:$0xff]   ;;  %v3803_v28 = vld [vmem:[#allocation2 + $0x78] sm:$0xff]  }
  0x1b   :  { %3386 = vmatprep.subr.bf16.mxu1 %v3784_v9  ;;  %v3800_v25 = vld [vmem:[#allocation2 + $0xf0] sm:$0xff]   ;;  %v3804_v29 = vld [vmem:[#allocation2 + $0xf8] sm:$0xff]   ;;  %v42_v32 = vld [vmem:[%s4409_s0 + $0x8] sm:$0xff] }
  0x1c   :  { %v3801_v26 = vld [vmem:[#allocation2 + $0x30] sm:$0xff]   ;;  %v3805_v30 = vld [vmem:[#allocation2 + $0x38] sm:$0xff]   ;;  %v74_v33 = vld [vmem:[%s4409_s0 + $0x108] sm:$0xff] }
  0x1d   :  { %3365 = vmatpush3.bf16.msra.mxu0 %v3785_v10  ;;  %v3802_v27 = vld [vmem:[#allocation2 + $0xb0] sm:$0xff]   ;;  %v3806_v31 = vld [vmem:[#allocation2 + $0xb8] sm:$0xff]   ;;  %v106_v35 = vpack.c.bf16 %v74_v33, %v42_v32  ;;  %v41_v37 = vld [vmem:[%s4409_s0] sm:$0xff] }
  0x1e   :  { %3387 = vmatpush3.bf16.msra.mxu1 %v3786_v11  ;;  %3366 = vmatprep.subr.bf16.mxu0 %v3787_v12  ;;  %v44_v34 = vld [vmem:[%s4409_s0 + $0x18] sm:$0xff]  ;;  %v73_v38 = vld [vmem:[%s4409_s0 + $0x100] sm:$0xff]  ;;  %v43_v41 = vld [vmem:[%s4409_s0 + $0x10] sm:$0xff] }
  0x1f   :  { %3388 = vmatprep.subr.bf16.mxu1 %v3788_v13  ;;  %v76_v36 = vld [vmem:[%s4409_s0 + $0x118] sm:$0xff]  ;;  %v105_v40 = vpack.c.bf16 %v73_v38, %v41_v37  ;;  %v75_v42 = vld [vmem:[%s4409_s0 + $0x110] sm:$0xff]  ;;  %2224 = vmatprep.mubr.bf16.mxu0 %v106_v35  ;;  %v3807_v44 = vld [vmem:[#allocation2 + $0x140] sm:$0xff]  }
  0x20   :  { %v108_v39 = vpack.c.bf16 %v76_v36, %v44_v34  ;;  %v107_v43 = vpack.c.bf16 %v75_v42, %v43_v41  ;;  %v3808_v45 = vld [vmem:[#allocation2 + $0x1c0] sm:$0xff]   ;;  %v3811_v48 = vld [vmem:[#allocation2 + $0x148] sm:$0xff]   ;;  %v3815_v52 = vld [vmem:[#allocation2 + $0x150] sm:$0xff]  }
  0x21   :  { %3367 = vmatpush3.bf16.msra.mxu0 %v3789_v14  ;;  %v3809_v46 = vld [vmem:[#allocation2 + $0x100] sm:$0xff]   ;;  %v3812_v49 = vld [vmem:[#allocation2 + $0x1c8] sm:$0xff]   ;;  %v3816_v53 = vld [vmem:[#allocation2 + $0x1d0] sm:$0xff]  }
  0x22   :  { %3389 = vmatpush3.bf16.msra.mxu1 %v3790_v15  ;;  %3368 = vmatprep.subr.bf16.mxu0 %v3791_v16  ;;  %v3810_v47 = vld [vmem:[#allocation2 + $0x180] sm:$0xff]   ;;  %v3813_v50 = vld [vmem:[#allocation2 + $0x108] sm:$0xff]   ;;  %v3817_v54 = vld [vmem:[#allocation2 + $0x110] sm:$0xff]  }
  0x23   :  { %3390 = vmatprep.subr.bf16.mxu1 %v3792_v17  ;;  %2265 = vmatprep.mubr.bf16.mxu1 %v108_v39  ;;  %v3814_v51 = vld [vmem:[#allocation2 + $0x188] sm:$0xff]   ;;  %v3818_v55 = vld [vmem:[#allocation2 + $0x190] sm:$0xff]   ;;  %v3819_v56 = vld [vmem:[#allocation2 + $0x158] sm:$0xff]  }
  0x24   :  { %v3820_v57 = vld [vmem:[#allocation2 + $0x1d8] sm:$0xff]   ;;  %v3823_v60 = vld [vmem:[#allocation2 + $0x160] sm:$0xff]   ;;  %v3827_v0 = vld [vmem:[#allocation2 + $0x168] sm:$0xff]  }
  0x25   :  { %3369 = vmatpush3.bf16.msra.mxu0 %v3793_v18  ;;  %v3821_v58 = vld [vmem:[#allocation2 + $0x118] sm:$0xff]   ;;  %v3824_v61 = vld [vmem:[#allocation2 + $0x1e0] sm:$0xff]   ;;  %v3828_v1 = vld [vmem:[#allocation2 + $0x1e8] sm:$0xff]  }
  0x26   :  { %3391 = vmatpush3.bf16.msra.mxu1 %v3794_v19  ;;  %3370 = vmatprep.subr.bf16.mxu0 %v3795_v20  ;;  %v3822_v59 = vld [vmem:[#allocation2 + $0x198] sm:$0xff]   ;;  %v3825_v62 = vld [vmem:[#allocation2 + $0x120] sm:$0xff]   ;;  %v3829_v2 = vld [vmem:[#allocation2 + $0x128] sm:$0xff]  }
  0x27   :  { %3392 = vmatprep.subr.bf16.mxu1 %v3796_v21  ;;  %v3826_v63 = vld [vmem:[#allocation2 + $0x1a0] sm:$0xff]   ;;  %v3830_v3 = vld [vmem:[#allocation2 + $0x1a8] sm:$0xff]   ;;  %v3831_v4 = vld [vmem:[#allocation2 + $0x170] sm:$0xff]  }
  0x28   :  { %v3832_v5 = vld [vmem:[#allocation2 + $0x1f0] sm:$0xff]   ;;  %v3835_v8 = vld [vmem:[#allocation2 + $0x178] sm:$0xff]   ;;  %v46_v12 = vld [vmem:[%s4409_s0 + $0x28] sm:$0xff] }
  0x29   :  { %3371 = vmatpush3.bf16.msra.mxu0 %v3797_v22  ;;  %v3833_v6 = vld [vmem:[#allocation2 + $0x130] sm:$0xff]   ;;  %v3836_v9 = vld [vmem:[#allocation2 + $0x1f8] sm:$0xff]   ;;  %v78_v13 = vld [vmem:[%s4409_s0 + $0x128] sm:$0xff] }
  0x2a   :  { %3393 = vmatpush3.bf16.msra.mxu1 %v3798_v23  ;;  %3372 = vmatprep.subr.bf16.mxu0 %v3799_v24  ;;  %v3834_v7 = vld [vmem:[#allocation2 + $0x1b0] sm:$0xff]   ;;  %v3837_v10 = vld [vmem:[#allocation2 + $0x138] sm:$0xff]   ;;  %v110_v16 = vpack.c.bf16 %v78_v13, %v46_v12  ;;  %v45_v18 = vld [vmem:[%s4409_s0 + $0x20] sm:$0xff] }
  0x2b   :  { %3394 = vmatprep.subr.bf16.mxu1 %v3800_v25  ;;  %v3838_v11 = vld [vmem:[#allocation2 + $0x1b8] sm:$0xff]   ;;  %v77_v19 = vld [vmem:[%s4409_s0 + $0x120] sm:$0xff]  ;;  %v47_v20 = vld [vmem:[%s4409_s0 + $0x30] sm:$0xff] }
  0x2c   :  { %v48_v14 = vld [vmem:[%s4409_s0 + $0x38] sm:$0xff]  ;;  %v109_v21 = vpack.c.bf16 %v77_v19, %v45_v18  ;;  %v79_v22 = vld [vmem:[%s4409_s0 + $0x130] sm:$0xff]  ;;  %v3839_v24 = vld [vmem:[#allocation2 + $0x240] sm:$0xff]  }
  0x2d   :  { %3373 = vmatpush3.bf16.msra.mxu0 %v3801_v26  ;;  %v80_v15 = vld [vmem:[%s4409_s0 + $0x138] sm:$0xff]  ;;  %v111_v23 = vpack.c.bf16 %v79_v22, %v47_v20  ;;  %v3840_v25 = vld [vmem:[#allocation2 + $0x2c0] sm:$0xff]   ;;  %v3847_v32 = vld [vmem:[#allocation2 + $0x250] sm:$0xff]  }
  0x2e   :  { %3395 = vmatpush3.bf16.msra.mxu1 %v3802_v27  ;;  %3374 = vmatprep.subr.bf16.mxu0 %v3803_v28  ;;  %v112_v17 = vpack.c.bf16 %v80_v15, %v48_v14  ;;  %v3841_v26 = vld [vmem:[#allocation2 + $0x200] sm:$0xff]   ;;  %v3843_v28 = vld [vmem:[#allocation2 + $0x248] sm:$0xff]   ;;  %v3848_v33 = vld [vmem:[#allocation2 + $0x2d0] sm:$0xff]  }
  0x2f   :  { %3396 = vmatprep.subr.bf16.mxu1 %v3804_v29  ;;  %v3842_v27 = vld [vmem:[#allocation2 + $0x280] sm:$0xff]   ;;  %v3844_v29 = vld [vmem:[#allocation2 + $0x2c8] sm:$0xff]   ;;  %v3849_v34 = vld [vmem:[#allocation2 + $0x210] sm:$0xff]  }
  0x30   :  { %v3850_v35 = vld [vmem:[#allocation2 + $0x290] sm:$0xff]   ;;  %v3851_v36 = vld [vmem:[#allocation2 + $0x258] sm:$0xff]   ;;  %v3856_v41 = vld [vmem:[#allocation2 + $0x2e0] sm:$0xff]  }
  0x31   :  { %3375 = vmatpush3.bf16.msra.mxu0 %v3805_v30  ;;  %v3845_v30 = vld [vmem:[#allocation2 + $0x208] sm:$0xff]   ;;  %v3852_v37 = vld [vmem:[#allocation2 + $0x2d8] sm:$0xff]   ;;  %v3857_v42 = vld [vmem:[#allocation2 + $0x220] sm:$0xff]  }
  0x32   :  { %3397 = vmatpush3.bf16.msra.mxu1 %v3806_v31  ;;  %3404 = vmatprep.subr.bf16.mxu0 %v3807_v44  ;;  %v3846_v31 = vld [vmem:[#allocation2 + $0x288] sm:$0xff]   ;;  %v3853_v38 = vld [vmem:[#allocation2 + $0x218] sm:$0xff]   ;;  %v3879_v12 = vld [vmem:[#allocation2 + $0x350] sm:$0xff]  }
  0x33   :  { %3426 = vmatprep.subr.bf16.mxu1 %v3808_v45  ;;  %v3854_v39 = vld [vmem:[#allocation2 + $0x298] sm:$0xff]   ;;  %v3859_v44 = vld [vmem:[#allocation2 + $0x268] sm:$0xff]   ;;  %v3880_v13 = vld [vmem:[#allocation2 + $0x3d0] sm:$0xff]  }
  0x34   :  { %2225 = vmatmul.mubr.bf16.vlgmr.msra.gmra.mrb[0].mxu0 %v105_v40  ;;  %v3855_v40 = vld [vmem:[#allocation2 + $0x260] sm:$0xff]   ;;  %v3860_v45 = vld [vmem:[#allocation2 + $0x2e8] sm:$0xff]   ;;  %v3881_v14 = vld [vmem:[#allocation2 + $0x310] sm:$0xff]  }
  0x35   :  { %2266 = vmatmul.mubr.bf16.vlgmr.msra.gmra.mrb[0].mxu1 %v107_v43  ;;  %3405 = vmatpush3.bf16.msra.mxu0 %v3809_v46  ;;  %v3858_v43 = vld [vmem:[#allocation2 + $0x2a0] sm:$0xff]   ;;  %v3861_v46 = vld [vmem:[#allocation2 + $0x228] sm:$0xff]   ;;  %v3882_v15 = vld [vmem:[#allocation2 + $0x390] sm:$0xff]  }
  0x36   :  { %3427 = vmatpush3.bf16.msra.mxu1 %v3810_v47  ;;  %3406 = vmatprep.subr.bf16.mxu0 %v3811_v48  ;;  %v3862_v47 = vld [vmem:[#allocation2 + $0x2a8] sm:$0xff]   ;;  %v3863_v48 = vld [vmem:[#allocation2 + $0x270] sm:$0xff]   ;;  %v3885_v18 = vld [vmem:[#allocation2 + $0x318] sm:$0xff]  }
  0x37   :  { %3428 = vmatprep.subr.bf16.mxu1 %v3812_v49  ;;  %2306 = vmatprep.mubr.bf16.mxu0 %v110_v16  ;;  %v3864_v49 = vld [vmem:[#allocation2 + $0x2f0] sm:$0xff]   ;;  %v3883_v16 = vld [vmem:[#allocation2 + $0x358] sm:$0xff]   ;;  %v3887_v20 = vld [vmem:[#allocation2 + $0x360] sm:$0xff]  }
  0x38   :  { %2347 = vmatprep.mubr.bf16.mxu1 %v112_v17  ;;  %v3884_v17 = vld [vmem:[#allocation2 + $0x3d8] sm:$0xff]   ;;  %v3889_v22 = vld [vmem:[#allocation2 + $0x320] sm:$0xff]  }
  0x39   :  { %3407 = vmatpush3.bf16.msra.mxu0 %v3813_v50  ;;  %v3865_v50 = vld [vmem:[#allocation2 + $0x230] sm:$0xff]   ;;  %v3886_v19 = vld [vmem:[#allocation2 + $0x398] sm:$0xff]  }
  0x3a   :  { %3429 = vmatpush3.bf16.msra.mxu1 %v3814_v51  ;;  %3408 = vmatprep.subr.bf16.mxu0 %v3815_v52  ;;  %v3866_v51 = vld [vmem:[#allocation2 + $0x2b0] sm:$0xff]   ;;  %v3867_v52 = vld [vmem:[#allocation2 + $0x278] sm:$0xff]  }
  0x3b   :  { %3430 = vmatprep.subr.bf16.mxu1 %v3816_v53  ;;  %v3868_v53 = vld [vmem:[#allocation2 + $0x2f8] sm:$0xff]  }
  0x3d   :  { %3409 = vmatpush3.bf16.msra.mxu0 %v3817_v54  ;;  %v3869_v54 = vld [vmem:[#allocation2 + $0x238] sm:$0xff]  }
  0x3e   :  { %3431 = vmatpush3.bf16.msra.mxu1 %v3818_v55  ;;  %3410 = vmatprep.subr.bf16.mxu0 %v3819_v56  ;;  %v3870_v55 = vld [vmem:[#allocation2 + $0x2b8] sm:$0xff]   ;;  %v50_v56 = vld [vmem:[%s4409_s0 + $0x48] sm:$0xff] }
  0x3f   :  { %3432 = vmatprep.subr.bf16.mxu1 %v3820_v57  ;;  %v82_v57 = vld [vmem:[%s4409_s0 + $0x148] sm:$0xff] }
  0x41   :  { %3411 = vmatpush3.bf16.msra.mxu0 %v3821_v58  ;;  %v114_v58 = vpack.c.bf16 %v82_v57, %v50_v56  ;;  %v3911_v56 = vld [vmem:[#allocation2 + $0x450] sm:$0xff]  }
  0x42   :  { %3433 = vmatpush3.bf16.msra.mxu1 %v3822_v59  ;;  %3412 = vmatprep.subr.bf16.mxu0 %v3823_v60  ;;  %v52_v59 = vld [vmem:[%s4409_s0 + $0x58] sm:$0xff]  ;;  %v3912_v57 = vld [vmem:[#allocation2 + $0x4d0] sm:$0xff]  }
  0x43   :  { %3434 = vmatprep.subr.bf16.mxu1 %v3824_v61  ;;  %v84_v60 = vld [vmem:[%s4409_s0 + $0x158] sm:$0xff]  ;;  %v49_v61 = vld [vmem:[%s4409_s0 + $0x40] sm:$0xff] }
  0x45   :  { %3413 = vmatpush3.bf16.msra.mxu0 %v3825_v62  ;;  %v116_v62 = vpack.c.bf16 %v84_v60, %v52_v59  ;;  %v3914_v59 = vld [vmem:[#allocation2 + $0x490] sm:$0xff]   ;;  %v3915_v60 = vld [vmem:[#allocation2 + $0x458] sm:$0xff]  }
  0x46   :  { %3435 = vmatpush3.bf16.msra.mxu1 %v3826_v63  ;;  %3414 = vmatprep.subr.bf16.mxu0 %v3827_v0  ;;  %v81_v63 = vld [vmem:[%s4409_s0 + $0x140] sm:$0xff]  ;;  %v51_v0 = vld [vmem:[%s4409_s0 + $0x50] sm:$0xff] }
  0x47   :  { %3436 = vmatprep.subr.bf16.mxu1 %v3828_v1  ;;  %v83_v1 = vld [vmem:[%s4409_s0 + $0x150] sm:$0xff] }
  0x49   :  { %3415 = vmatpush3.bf16.msra.mxu0 %v3829_v2  ;;  %v113_v2 = vpack.c.bf16 %v81_v63, %v49_v61  ;;  %v3916_v61 = vld [vmem:[#allocation2 + $0x4d8] sm:$0xff]  }
  0x4a   :  { %3437 = vmatpush3.bf16.msra.mxu1 %v3830_v3  ;;  %3416 = vmatprep.subr.bf16.mxu0 %v3831_v4  ;;  %v115_v3 = vpack.c.bf16 %v83_v1, %v51_v0  ;;  %v3871_v4 = vld [vmem:[#allocation2 + $0x340] sm:$0xff]   ;;  %v3918_v63 = vld [vmem:[#allocation2 + $0x498] sm:$0xff]  }
  0x4b   :  { %3438 = vmatprep.subr.bf16.mxu1 %v3832_v5  ;;  %v3872_v5 = vld [vmem:[#allocation2 + $0x3c0] sm:$0xff]  }
  0x4c   :  { %v3919_v0 = vld [vmem:[#allocation2 + $0x460] sm:$0xff]  }
  0x4d   :  { %3417 = vmatpush3.bf16.msra.mxu0 %v3833_v6  ;;  %v3873_v6 = vld [vmem:[#allocation2 + $0x300] sm:$0xff]  }
  0x4e   :  { %3439 = vmatpush3.bf16.msra.mxu1 %v3834_v7  ;;  %3418 = vmatprep.subr.bf16.mxu0 %v3835_v8  ;;  %v3874_v7 = vld [vmem:[#allocation2 + $0x380] sm:$0xff]   ;;  %v3875_v8 = vld [vmem:[#allocation2 + $0x348] sm:$0xff]  }
  0x4f   :  { %3440 = vmatprep.subr.bf16.mxu1 %v3836_v9  ;;  %v3876_v9 = vld [vmem:[#allocation2 + $0x3c8] sm:$0xff]   ;;  %v3920_v1 = vld [vmem:[#allocation2 + $0x4e0] sm:$0xff]  }
  0x51   :  { %3419 = vmatpush3.bf16.msra.mxu0 %v3837_v10  ;;  %v3877_v10 = vld [vmem:[#allocation2 + $0x308] sm:$0xff]  }
  0x52   :  { %3441 = vmatpush3.bf16.msra.mxu1 %v3838_v11  ;;  %3448 = vmatprep.subr.bf16.mxu0 %v3839_v24  ;;  %v3878_v11 = vld [vmem:[#allocation2 + $0x388] sm:$0xff]  }
  0x53   :  { %3470 = vmatprep.subr.bf16.mxu1 %v3840_v25  ;;  %v3891_v24 = vld [vmem:[#allocation2 + $0x368] sm:$0xff]  }
  0x54   :  { %2307 = vmatmul.mubr.bf16.vlgmr.msra.gmra.mrb[4].mxu0 %v109_v21  ;;  %v3888_v21 = vld [vmem:[#allocation2 + $0x3e0] sm:$0xff]   ;;  %v3892_v25 = vld [vmem:[#allocation2 + $0x3e8] sm:$0xff]  }
  0x55   :  { %2348 = vmatmul.mubr.bf16.vlgmr.msra.gmra.mrb[4].mxu1 %v111_v23  ;;  %3449 = vmatpush3.bf16.msra.mxu0 %v3841_v26  ;;  %v3890_v23 = vld [vmem:[#allocation2 + $0x3a0] sm:$0xff]   ;;  %v3893_v26 = vld [vmem:[#allocation2 + $0x328] sm:$0xff]  }
  0x56   :  { %3471 = vmatpush3.bf16.msra.mxu1 %v3842_v27  ;;  %3450 = vmatprep.subr.bf16.mxu0 %v3843_v28  ;;  %v3894_v27 = vld [vmem:[#allocation2 + $0x3a8] sm:$0xff]   ;;  %v3895_v28 = vld [vmem:[#allocation2 + $0x370] sm:$0xff]  }
  0x57   :  { %3472 = vmatprep.subr.bf16.mxu1 %v3844_v29  ;;  %2388 = vmatprep.mubr.bf16.mxu0 %v114_v58  ;;  %v3896_v29 = vld [vmem:[#allocation2 + $0x3f0] sm:$0xff]  }
  0x58   :  { %2429 = vmatprep.mubr.bf16.mxu1 %v116_v62  ;;  %v3913_v58 = vld [vmem:[#allocation2 + $0x410] sm:$0xff]   ;;  %v3917_v62 = vld [vmem:[#allocation2 + $0x418] sm:$0xff]  }
  0x59   :  { %3451 = vmatpush3.bf16.msra.mxu0 %v3845_v30  ;;  %v3897_v30 = vld [vmem:[#allocation2 + $0x330] sm:$0xff]  }
  0x5a   :  { %3473 = vmatpush3.bf16.msra.mxu1 %v3846_v31  ;;  %3452 = vmatprep.subr.bf16.mxu0 %v3847_v32  ;;  %v3898_v31 = vld [vmem:[#allocation2 + $0x3b0] sm:$0xff]   ;;  %v3899_v32 = vld [vmem:[#allocation2 + $0x378] sm:$0xff]  }
  0x5b   :  { %3474 = vmatprep.subr.bf16.mxu1 %v3848_v33  ;;  %v3900_v33 = vld [vmem:[#allocation2 + $0x3f8] sm:$0xff]  }
  0x5d   :  { %3453 = vmatpush3.bf16.msra.mxu0 %v3849_v34  ;;  %v3901_v34 = vld [vmem:[#allocation2 + $0x338] sm:$0xff]  }
  0x5e   :  { %3475 = vmatpush3.bf16.msra.mxu1 %v3850_v35  ;;  %3454 = vmatprep.subr.bf16.mxu0 %v3851_v36  ;;  %v3902_v35 = vld [vmem:[#allocation2 + $0x3b8] sm:$0xff]   ;;  %v54_v36 = vld [vmem:[%s4409_s0 + $0x68] sm:$0xff] }
  0x5f   :  { %3476 = vmatprep.subr.bf16.mxu1 %v3852_v37  ;;  %v86_v37 = vld [vmem:[%s4409_s0 + $0x168] sm:$0xff] }
  0x61   :  { %3455 = vmatpush3.bf16.msra.mxu0 %v3853_v38  ;;  %v56_v38 = vld [vmem:[%s4409_s0 + $0x78] sm:$0xff] }
  0x62   :  { %3477 = vmatpush3.bf16.msra.mxu1 %v3854_v39  ;;  %3456 = vmatprep.subr.bf16.mxu0 %v3855_v40  ;;  %v118_v39 = vpack.c.bf16 %v86_v37, %v54_v36  ;;  %v88_v40 = vld [vmem:[%s4409_s0 + $0x178] sm:$0xff]  ;;  %v3943_v36 = vld [vmem:[#allocation2 + $0x550] sm:$0xff]  }
  0x63   :  { %3478 = vmatprep.subr.bf16.mxu1 %v3856_v41  ;;  %v53_v41 = vld [vmem:[%s4409_s0 + $0x60] sm:$0xff]  ;;  %v3944_v37 = vld [vmem:[#allocation2 + $0x5d0] sm:$0xff]  }
  0x65   :  { %3457 = vmatpush3.bf16.msra.mxu0 %v3857_v42  ;;  %v85_v42 = vld [vmem:[%s4409_s0 + $0x160] sm:$0xff] }
  0x66   :  { %3479 = vmatpush3.bf16.msra.mxu1 %v3858_v43  ;;  %3458 = vmatprep.subr.bf16.mxu0 %v3859_v44  ;;  %v120_v43 = vpack.c.bf16 %v88_v40, %v56_v38  ;;  %v117_v44 = vpack.c.bf16 %v85_v42, %v53_v41  ;;  %v3945_v38 = vld [vmem:[#allocation2 + $0x510] sm:$0xff]   ;;  %v3947_v40 = vld [vmem:[#allocation2 + $0x558] sm:$0xff]  }
  0x67   :  { %3480 = vmatprep.subr.bf16.mxu1 %v3860_v45  ;;  %v55_v45 = vld [vmem:[%s4409_s0 + $0x70] sm:$0xff]  ;;  %v3948_v41 = vld [vmem:[#allocation2 + $0x5d8] sm:$0xff]  }
  0x68   :  { %v3949_v42 = vld [vmem:[#allocation2 + $0x518] sm:$0xff]  }
  0x69   :  { %3459 = vmatpush3.bf16.msra.mxu0 %v3861_v46  ;;  %v87_v46 = vld [vmem:[%s4409_s0 + $0x170] sm:$0xff] }
  0x6a   :  { %3481 = vmatpush3.bf16.msra.mxu1 %v3862_v47  ;;  %3460 = vmatprep.subr.bf16.mxu0 %v3863_v48  ;;  %v119_v47 = vpack.c.bf16 %v87_v46, %v55_v45  ;;  %v3903_v48 = vld [vmem:[#allocation2 + $0x440] sm:$0xff]  }
  0x6b   :  { %3482 = vmatprep.subr.bf16.mxu1 %v3864_v49  ;;  %v3904_v49 = vld [vmem:[#allocation2 + $0x4c0] sm:$0xff]  }
  0x6c   :  { %v3952_v45 = vld [vmem:[#allocation2 + $0x5e0] sm:$0xff]  }
  0x6d   :  { %3461 = vmatpush3.bf16.msra.mxu0 %v3865_v50  ;;  %v3905_v50 = vld [vmem:[#allocation2 + $0x400] sm:$0xff]  }
  0x6e   :  { %3483 = vmatpush3.bf16.msra.mxu1 %v3866_v51  ;;  %3462 = vmatprep.subr.bf16.mxu0 %v3867_v52  ;;  %v3906_v51 = vld [vmem:[#allocation2 + $0x480] sm:$0xff]   ;;  %v3907_v52 = vld [vmem:[#allocation2 + $0x448] sm:$0xff]  }
  0x6f   :  { %3484 = vmatprep.subr.bf16.mxu1 %v3868_v53  ;;  %v3908_v53 = vld [vmem:[#allocation2 + $0x4c8] sm:$0xff]   ;;  %v3953_v46 = vld [vmem:[#allocation2 + $0x520] sm:$0xff]  }
  0x71   :  { %3463 = vmatpush3.bf16.msra.mxu0 %v3869_v54  ;;  %v3909_v54 = vld [vmem:[#allocation2 + $0x408] sm:$0xff]  }
  0x72   :  { %3485 = vmatpush3.bf16.msra.mxu1 %v3870_v55  ;;  %3492 = vmatprep.subr.bf16.mxu0 %v3871_v4  ;;  %v3910_v55 = vld [vmem:[#allocation2 + $0x488] sm:$0xff]  }
  0x73   :  { %3514 = vmatprep.subr.bf16.mxu1 %v3872_v5  ;;  %v3923_v4 = vld [vmem:[#allocation2 + $0x468] sm:$0xff]  }
  0x74   :  { %2389 = vmatmul.mubr.bf16.vlgmr.msra.gmra.mrb[8].mxu0 %v113_v2  ;;  %v3921_v2 = vld [vmem:[#allocation2 + $0x420] sm:$0xff]   ;;  %v3924_v5 = vld [vmem:[#allocation2 + $0x4e8] sm:$0xff]  }
  0x75   :  { %2430 = vmatmul.mubr.bf16.vlgmr.msra.gmra.mrb[8].mxu1 %v115_v3  ;;  %3493 = vmatpush3.bf16.msra.mxu0 %v3873_v6  ;;  %v3922_v3 = vld [vmem:[#allocation2 + $0x4a0] sm:$0xff]   ;;  %v3925_v6 = vld [vmem:[#allocation2 + $0x428] sm:$0xff]  }
  0x76   :  { %3515 = vmatpush3.bf16.msra.mxu1 %v3874_v7  ;;  %3494 = vmatprep.subr.bf16.mxu0 %v3875_v8  ;;  %v3926_v7 = vld [vmem:[#allocation2 + $0x4a8] sm:$0xff]   ;;  %v3927_v8 = vld [vmem:[#allocation2 + $0x470] sm:$0xff]  }
  0x77   :  { %3516 = vmatprep.subr.bf16.mxu1 %v3876_v9  ;;  %2470 = vmatprep.mubr.bf16.mxu0 %v118_v39  ;;  %v3928_v9 = vld [vmem:[#allocation2 + $0x4f0] sm:$0xff]  }
  0x78   :  { %2511 = vmatprep.mubr.bf16.mxu1 %v120_v43  ;;  %v3946_v39 = vld [vmem:[#allocation2 + $0x590] sm:$0xff]   ;;  %v3950_v43 = vld [vmem:[#allocation2 + $0x598] sm:$0xff]  }
  0x79   :  { %3495 = vmatpush3.bf16.msra.mxu0 %v3877_v10  ;;  %v3929_v10 = vld [vmem:[#allocation2 + $0x430] sm:$0xff]  }
  0x7a   :  { %3517 = vmatpush3.bf16.msra.mxu1 %v3878_v11  ;;  %3496 = vmatprep.subr.bf16.mxu0 %v3879_v12  ;;  %v3930_v11 = vld [vmem:[#allocation2 + $0x4b0] sm:$0xff]   ;;  %v3931_v12 = vld [vmem:[#allocation2 + $0x478] sm:$0xff]  }
  0x7b   :  { %3518 = vmatprep.subr.bf16.mxu1 %v3880_v13  ;;  %v3932_v13 = vld [vmem:[#allocation2 + $0x4f8] sm:$0xff]  }
  0x7d   :  { %3497 = vmatpush3.bf16.msra.mxu0 %v3881_v14  ;;  %v3933_v14 = vld [vmem:[#allocation2 + $0x438] sm:$0xff]  }
  0x7e   :  { %3519 = vmatpush3.bf16.msra.mxu1 %v3882_v15  ;;  %3498 = vmatprep.subr.bf16.mxu0 %v3883_v16  ;;  %v3934_v15 = vld [vmem:[#allocation2 + $0x4b8] sm:$0xff]   ;;  %v58_v16 = vld [vmem:[%s4409_s0 + $0x88] sm:$0xff] }
  0x7f   :  { %3520 = vmatprep.subr.bf16.mxu1 %v3884_v17  ;;  %v90_v17 = vld [vmem:[%s4409_s0 + $0x188] sm:$0xff] }
  0x81   :  { %3499 = vmatpush3.bf16.msra.mxu0 %v3885_v18  ;;  %v60_v18 = vld [vmem:[%s4409_s0 + $0x98] sm:$0xff] }
  0x82   :  { %3521 = vmatpush3.bf16.msra.mxu1 %v3886_v19  ;;  %3500 = vmatprep.subr.bf16.mxu0 %v3887_v20  ;;  %v92_v19 = vld [vmem:[%s4409_s0 + $0x198] sm:$0xff]  ;;  %v122_v20 = vpack.c.bf16 %v90_v17, %v58_v16  ;;  %v3975_v16 = vld [vmem:[#allocation2 + $0x650] sm:$0xff]  }
  0x83   :  { %3522 = vmatprep.subr.bf16.mxu1 %v3888_v21  ;;  %v124_v21 = vpack.c.bf16 %v92_v19, %v60_v18  ;;  %v3976_v17 = vld [vmem:[#allocation2 + $0x6d0] sm:$0xff]  }
  0x84   :  { %v3977_v18 = vld [vmem:[#allocation2 + $0x610] sm:$0xff]  }
  0x85   :  { %3501 = vmatpush3.bf16.msra.mxu0 %v3889_v22  ;;  %v57_v22 = vld [vmem:[%s4409_s0 + $0x80] sm:$0xff]  ;;  %v3978_v19 = vld [vmem:[#allocation2 + $0x690] sm:$0xff]  }
  0x86   :  { %3523 = vmatpush3.bf16.msra.mxu1 %v3890_v23  ;;  %3502 = vmatprep.subr.bf16.mxu0 %v3891_v24  ;;  %v89_v23 = vld [vmem:[%s4409_s0 + $0x180] sm:$0xff]  ;;  %v59_v24 = vld [vmem:[%s4409_s0 + $0x90] sm:$0xff] }
  0x87   :  { %3524 = vmatprep.subr.bf16.mxu1 %v3892_v25  ;;  %v121_v25 = vpack.c.bf16 %v89_v23, %v57_v22  ;;  %v3981_v22 = vld [vmem:[#allocation2 + $0x618] sm:$0xff]  }
  0x88   :  { %v3982_v23 = vld [vmem:[#allocation2 + $0x698] sm:$0xff]  }
  0x89   :  { %3503 = vmatpush3.bf16.msra.mxu0 %v3893_v26  ;;  %v91_v26 = vld [vmem:[%s4409_s0 + $0x190] sm:$0xff] }
  0x8a   :  { %3525 = vmatpush3.bf16.msra.mxu1 %v3894_v27  ;;  %3504 = vmatprep.subr.bf16.mxu0 %v3895_v28  ;;  %v123_v27 = vpack.c.bf16 %v91_v26, %v59_v24  ;;  %v3935_v28 = vld [vmem:[#allocation2 + $0x540] sm:$0xff]  }
  0x8b   :  { %3526 = vmatprep.subr.bf16.mxu1 %v3896_v29  ;;  %v3936_v29 = vld [vmem:[#allocation2 + $0x5c0] sm:$0xff]  }
  0x8c   :  { %v3983_v24 = vld [vmem:[#allocation2 + $0x660] sm:$0xff]  }
  0x8d   :  { %3505 = vmatpush3.bf16.msra.mxu0 %v3897_v30  ;;  %v3937_v30 = vld [vmem:[#allocation2 + $0x500] sm:$0xff]  }
  0x8e   :  { %3527 = vmatpush3.bf16.msra.mxu1 %v3898_v31  ;;  %3506 = vmatprep.subr.bf16.mxu0 %v3899_v32  ;;  %v3938_v31 = vld [vmem:[#allocation2 + $0x580] sm:$0xff]   ;;  %v3939_v32 = vld [vmem:[#allocation2 + $0x548] sm:$0xff]  }
  0x8f   :  { %3528 = vmatprep.subr.bf16.mxu1 %v3900_v33  ;;  %v3940_v33 = vld [vmem:[#allocation2 + $0x5c8] sm:$0xff]   ;;  %v3985_v26 = vld [vmem:[#allocation2 + $0x620] sm:$0xff]  }
  0x91   :  { %3507 = vmatpush3.bf16.msra.mxu0 %v3901_v34  ;;  %v3941_v34 = vld [vmem:[#allocation2 + $0x508] sm:$0xff]  }
  0x92   :  { %3529 = vmatpush3.bf16.msra.mxu1 %v3902_v35  ;;  %3536 = vmatprep.subr.bf16.mxu0 %v3903_v48  ;;  %v3942_v35 = vld [vmem:[#allocation2 + $0x588] sm:$0xff]  }
  0x93   :  { %3558 = vmatprep.subr.bf16.mxu1 %v3904_v49  ;;  %v3955_v48 = vld [vmem:[#allocation2 + $0x568] sm:$0xff]  }
  0x94   :  { %2471 = vmatmul.mubr.bf16.vlgmr.msra.gmra.mrb[12].mxu0 %v117_v44  ;;  %v3951_v44 = vld [vmem:[#allocation2 + $0x560] sm:$0xff]   ;;  %v3956_v49 = vld [vmem:[#allocation2 + $0x5e8] sm:$0xff]  }
  0x95   :  { %2512 = vmatmul.mubr.bf16.vlgmr.msra.gmra.mrb[12].mxu1 %v119_v47  ;;  %3537 = vmatpush3.bf16.msra.mxu0 %v3905_v50  ;;  %v3954_v47 = vld [vmem:[#allocation2 + $0x5a0] sm:$0xff]   ;;  %v3957_v50 = vld [vmem:[#allocation2 + $0x528] sm:$0xff]  }
  0x96   :  { %3559 = vmatpush3.bf16.msra.mxu1 %v3906_v51  ;;  %3538 = vmatprep.subr.bf16.mxu0 %v3907_v52  ;;  %v3958_v51 = vld [vmem:[#allocation2 + $0x5a8] sm:$0xff]   ;;  %v3959_v52 = vld [vmem:[#allocation2 + $0x570] sm:$0xff]  }
  0x97   :  { %3560 = vmatprep.subr.bf16.mxu1 %v3908_v53  ;;  %2552 = vmatprep.mubr.bf16.mxu0 %v122_v20  ;;  %v3960_v53 = vld [vmem:[#allocation2 + $0x5f0] sm:$0xff]   ;;  %v3979_v20 = vld [vmem:[#allocation2 + $0x658] sm:$0xff]  }
  0x98   :  { %2593 = vmatprep.mubr.bf16.mxu1 %v124_v21  ;;  %v3980_v21 = vld [vmem:[#allocation2 + $0x6d8] sm:$0xff]  }
  0x99   :  { %3539 = vmatpush3.bf16.msra.mxu0 %v3909_v54  ;;  %v3961_v54 = vld [vmem:[#allocation2 + $0x530] sm:$0xff]  }
  0x9a   :  { %3561 = vmatpush3.bf16.msra.mxu1 %v3910_v55  ;;  %3540 = vmatprep.subr.bf16.mxu0 %v3911_v56  ;;  %v3962_v55 = vld [vmem:[#allocation2 + $0x5b0] sm:$0xff]   ;;  %v3963_v56 = vld [vmem:[#allocation2 + $0x578] sm:$0xff]  }
  0x9b   :  { %3562 = vmatprep.subr.bf16.mxu1 %v3912_v57  ;;  %v3964_v57 = vld [vmem:[#allocation2 + $0x5f8] sm:$0xff]  }
  0x9d   :  { %3541 = vmatpush3.bf16.msra.mxu0 %v3913_v58  ;;  %v3965_v58 = vld [vmem:[#allocation2 + $0x538] sm:$0xff]  }
  0x9e   :  { %3563 = vmatpush3.bf16.msra.mxu1 %v3914_v59  ;;  %3542 = vmatprep.subr.bf16.mxu0 %v3915_v60  ;;  %v3966_v59 = vld [vmem:[#allocation2 + $0x5b8] sm:$0xff]   ;;  %v62_v60 = vld [vmem:[%s4409_s0 + $0xa8] sm:$0xff] }
  0x9f   :  { %3564 = vmatprep.subr.bf16.mxu1 %v3916_v61  ;;  %v94_v61 = vld [vmem:[%s4409_s0 + $0x1a8] sm:$0xff] }
  0xa1   :  { %3543 = vmatpush3.bf16.msra.mxu0 %v3917_v62  ;;  %v126_v62 = vpack.c.bf16 %v94_v61, %v62_v60  ;;  %v4005_v60 = vld [vmem:[#allocation2 + $0x708] sm:$0xff]  }
  0xa2   :  { %3565 = vmatpush3.bf16.msra.mxu1 %v3918_v63  ;;  %3544 = vmatprep.subr.bf16.mxu0 %v3919_v0  ;;  %v64_v63 = vld [vmem:[%s4409_s0 + $0xb8] sm:$0xff] }
  0xa3   :  { %3566 = vmatprep.subr.bf16.mxu1 %v3920_v1  ;;  %v96_v0 = vld [vmem:[%s4409_s0 + $0x1b8] sm:$0xff]  ;;  %v61_v1 = vld [vmem:[%s4409_s0 + $0xa0] sm:$0xff] }
  0xa5   :  { %3545 = vmatpush3.bf16.msra.mxu0 %v3921_v2  ;;  %v128_v2 = vpack.c.bf16 %v96_v0, %v64_v63 }
  0xa6   :  { %3567 = vmatpush3.bf16.msra.mxu1 %v3922_v3  ;;  %3546 = vmatprep.subr.bf16.mxu0 %v3923_v4  ;;  %v93_v3 = vld [vmem:[%s4409_s0 + $0x1a0] sm:$0xff]  ;;  %v63_v4 = vld [vmem:[%s4409_s0 + $0xb0] sm:$0xff] }
  0xa7   :  { %3568 = vmatprep.subr.bf16.mxu1 %v3924_v5  ;;  %v95_v5 = vld [vmem:[%s4409_s0 + $0x1b0] sm:$0xff] }
  0xa9   :  { %3547 = vmatpush3.bf16.msra.mxu0 %v3925_v6  ;;  %v125_v6 = vpack.c.bf16 %v93_v3, %v61_v1  ;;  %v4007_v1 = vld [vmem:[#allocation2 + $0x750] sm:$0xff]  }
  0xaa   :  { %3569 = vmatpush3.bf16.msra.mxu1 %v3926_v7  ;;  %3548 = vmatprep.subr.bf16.mxu0 %v3927_v8  ;;  %v127_v7 = vpack.c.bf16 %v95_v5, %v63_v4  ;;  %v3967_v8 = vld [vmem:[#allocation2 + $0x640] sm:$0xff]   ;;  %v4008_v4 = vld [vmem:[#allocation2 + $0x7d0] sm:$0xff]  }
  0xab   :  { %3570 = vmatprep.subr.bf16.mxu1 %v3928_v9  ;;  %v3968_v9 = vld [vmem:[#allocation2 + $0x6c0] sm:$0xff]  }
  0xad   :  { %3549 = vmatpush3.bf16.msra.mxu0 %v3929_v10  ;;  %v3969_v10 = vld [vmem:[#allocation2 + $0x600] sm:$0xff]  }
  0xae   :  { %3571 = vmatpush3.bf16.msra.mxu1 %v3930_v11  ;;  %3550 = vmatprep.subr.bf16.mxu0 %v3931_v12  ;;  %v3970_v11 = vld [vmem:[#allocation2 + $0x680] sm:$0xff]   ;;  %v3971_v12 = vld [vmem:[#allocation2 + $0x648] sm:$0xff]  }
  0xaf   :  { %3572 = vmatprep.subr.bf16.mxu1 %v3932_v13  ;;  %v3972_v13 = vld [vmem:[#allocation2 + $0x6c8] sm:$0xff]  }
  0xb1   :  { %3551 = vmatpush3.bf16.msra.mxu0 %v3933_v14  ;;  %v3973_v14 = vld [vmem:[#allocation2 + $0x608] sm:$0xff]  }
  0xb2   :  { %3573 = vmatpush3.bf16.msra.mxu1 %v3934_v15  ;;  %3580 = vmatprep.subr.bf16.mxu0 %v3935_v28  ;;  %v3974_v15 = vld [vmem:[#allocation2 + $0x688] sm:$0xff]  }
  0xb3   :  { %3602 = vmatprep.subr.bf16.mxu1 %v3936_v29  ;;  %v3987_v28 = vld [vmem:[#allocation2 + $0x668] sm:$0xff]  }
  0xb4   :  { %2553 = vmatmul.mubr.bf16.vlgmr.msra.gmra.mrb[16].mxu0 %v121_v25  ;;  %v3984_v25 = vld [vmem:[#allocation2 + $0x6e0] sm:$0xff]   ;;  %v3988_v29 = vld [vmem:[#allocation2 + $0x6e8] sm:$0xff]  }
  0xb5   :  { %2594 = vmatmul.mubr.bf16.vlgmr.msra.gmra.mrb[16].mxu1 %v123_v27  ;;  %3581 = vmatpush3.bf16.msra.mxu0 %v3937_v30  ;;  %v3986_v27 = vld [vmem:[#allocation2 + $0x6a0] sm:$0xff]   ;;  %v3989_v30 = vld [vmem:[#allocation2 + $0x628] sm:$0xff]  }
  0xb6   :  { %3603 = vmatpush3.bf16.msra.mxu1 %v3938_v31  ;;  %3582 = vmatprep.subr.bf16.mxu0 %v3939_v32  ;;  %v3990_v31 = vld [vmem:[#allocation2 + $0x6a8] sm:$0xff]   ;;  %v3991_v32 = vld [vmem:[#allocation2 + $0x670] sm:$0xff]  }
  0xb7   :  { %3604 = vmatprep.subr.bf16.mxu1 %v3940_v33  ;;  %2634 = vmatprep.mubr.bf16.mxu0 %v126_v62  ;;  %v3992_v33 = vld [vmem:[#allocation2 + $0x6f0] sm:$0xff]   ;;  %v4006_v62 = vld [vmem:[#allocation2 + $0x788] sm:$0xff]  }
  0xb8   :  { %2675 = vmatprep.mubr.bf16.mxu1 %v128_v2 }
  0xb9   :  { %3583 = vmatpush3.bf16.msra.mxu0 %v3941_v34  ;;  %v3993_v34 = vld [vmem:[#allocation2 + $0x630] sm:$0xff]  }
  0xba   :  { %3605 = vmatpush3.bf16.msra.mxu1 %v3942_v35  ;;  %3584 = vmatprep.subr.bf16.mxu0 %v3943_v36  ;;  %v3994_v35 = vld [vmem:[#allocation2 + $0x6b0] sm:$0xff]   ;;  %v3995_v36 = vld [vmem:[#allocation2 + $0x678] sm:$0xff]  }
  0xbb   :  { %3606 = vmatprep.subr.bf16.mxu1 %v3944_v37  ;;  %v3996_v37 = vld [vmem:[#allocation2 + $0x6f8] sm:$0xff]  }
  0xbd   :  { %3585 = vmatpush3.bf16.msra.mxu0 %v3945_v38  ;;  %v3997_v38 = vld [vmem:[#allocation2 + $0x638] sm:$0xff]  }
  0xbe   :  { %3607 = vmatpush3.bf16.msra.mxu1 %v3946_v39  ;;  %3586 = vmatprep.subr.bf16.mxu0 %v3947_v40  ;;  %v3998_v39 = vld [vmem:[#allocation2 + $0x6b8] sm:$0xff]   ;;  %v66_v40 = vld [vmem:[%s4409_s0 + $0xc8] sm:$0xff] }
  0xbf   :  { %3608 = vmatprep.subr.bf16.mxu1 %v3948_v41  ;;  %v98_v41 = vld [vmem:[%s4409_s0 + $0x1c8] sm:$0xff] }
  0xc1   :  { %3587 = vmatpush3.bf16.msra.mxu0 %v3949_v42  ;;  %v68_v42 = vld [vmem:[%s4409_s0 + $0xd8] sm:$0xff] }
  0xc2   :  { %3609 = vmatpush3.bf16.msra.mxu1 %v3950_v43  ;;  %3588 = vmatprep.subr.bf16.mxu0 %v3951_v44  ;;  %v130_v43 = vpack.c.bf16 %v98_v41, %v66_v40  ;;  %v100_v44 = vld [vmem:[%s4409_s0 + $0x1d8] sm:$0xff] }
  0xc3   :  { %3610 = vmatprep.subr.bf16.mxu1 %v3952_v45  ;;  %v65_v45 = vld [vmem:[%s4409_s0 + $0xc0] sm:$0xff]  ;;  %v104_v41 = vld [vmem:[%s4409_s0 + $0x1f8] sm:$0xff] }
  0xc5   :  { %3589 = vmatpush3.bf16.msra.mxu0 %v3953_v46  ;;  %v97_v46 = vld [vmem:[%s4409_s0 + $0x1c0] sm:$0xff] }
  0xc6   :  { %3611 = vmatpush3.bf16.msra.mxu1 %v3954_v47  ;;  %3590 = vmatprep.subr.bf16.mxu0 %v3955_v48  ;;  %v132_v47 = vpack.c.bf16 %v100_v44, %v68_v42  ;;  %v129_v48 = vpack.c.bf16 %v97_v46, %v65_v45  ;;  %v69_v42 = vld [vmem:[%s4409_s0 + $0xe0] sm:$0xff]  ;;  %v71_v46 = vld [vmem:[%s4409_s0 + $0xf0] sm:$0xff] }
  0xc7   :  { %3612 = vmatprep.subr.bf16.mxu1 %v3956_v49  ;;  %v67_v49 = vld [vmem:[%s4409_s0 + $0xd0] sm:$0xff] }
  0xc9   :  { %3591 = vmatpush3.bf16.msra.mxu0 %v3957_v50  ;;  %v99_v50 = vld [vmem:[%s4409_s0 + $0x1d0] sm:$0xff] }
  0xca   :  { %3613 = vmatpush3.bf16.msra.mxu1 %v3958_v51  ;;  %3592 = vmatprep.subr.bf16.mxu0 %v3959_v52  ;;  %v131_v51 = vpack.c.bf16 %v99_v50, %v67_v49  ;;  %v3999_v52 = vld [vmem:[#allocation2 + $0x740] sm:$0xff]  }
  0xcb   :  { %3614 = vmatprep.subr.bf16.mxu1 %v3960_v53  ;;  %v4000_v53 = vld [vmem:[#allocation2 + $0x7c0] sm:$0xff]  }
  0xcd   :  { %3593 = vmatpush3.bf16.msra.mxu0 %v3961_v54  ;;  %v4001_v54 = vld [vmem:[#allocation2 + $0x700] sm:$0xff]  }
  0xce   :  { %3615 = vmatpush3.bf16.msra.mxu1 %v3962_v55  ;;  %3594 = vmatprep.subr.bf16.mxu0 %v3963_v56  ;;  %v4002_v55 = vld [vmem:[#allocation2 + $0x780] sm:$0xff]   ;;  %v4003_v56 = vld [vmem:[#allocation2 + $0x748] sm:$0xff]  }
  0xcf   :  { %3616 = vmatprep.subr.bf16.mxu1 %v3964_v57 }
  0xd1   :  { %3595 = vmatpush3.bf16.msra.mxu0 %v3965_v58  ;;  %v4004_v58 = vld [vmem:[#allocation2 + $0x7c8] sm:$0xff]  }
  0xd2   :  { %3617 = vmatpush3.bf16.msra.mxu1 %v3966_v59  ;;  %3624 = vmatprep.subr.bf16.mxu0 %v3967_v8  ;;  %v4010_v8 = vld [vmem:[#allocation2 + $0x790] sm:$0xff]  }
  0xd3   :  { %3646 = vmatprep.subr.bf16.mxu1 %v3968_v9 }
  0xd4   :  { %2635 = vmatmul.mubr.bf16.vlgmr.msra.gmra.mrb[20].mxu0 %v125_v6  ;;  %v4009_v6 = vld [vmem:[#allocation2 + $0x710] sm:$0xff]  }
  0xd5   :  { %2676 = vmatmul.mubr.bf16.vlgmr.msra.gmra.mrb[20].mxu1 %v127_v7  ;;  %3625 = vmatpush3.bf16.msra.mxu0 %v3969_v10 }
  0xd6   :  { %3647 = vmatpush3.bf16.msra.mxu1 %v3970_v11  ;;  %3626 = vmatprep.subr.bf16.mxu0 %v3971_v12  ;;  %v4011_v11 = vld [vmem:[#allocation2 + $0x758] sm:$0xff]  }
  0xd7   :  { %3648 = vmatprep.subr.bf16.mxu1 %v3972_v13  ;;  %2716 = vmatprep.mubr.bf16.mxu0 %v130_v43  ;;  %v4012_v13 = vld [vmem:[#allocation2 + $0x7d8] sm:$0xff]   ;;  %v101_v43 = vld [vmem:[%s4409_s0 + $0x1e0] sm:$0xff] }
  0xd8   :  { %2757 = vmatprep.mubr.bf16.mxu1 %v132_v47  ;;  %v133_v45 = vpack.c.bf16 %v101_v43, %v69_v42  ;;  %v103_v47 = vld [vmem:[%s4409_s0 + $0x1f0] sm:$0xff]  ;;  %v4039_v42 = vld [vmem:[%s4414_s5] sm:$0xff]  }
  0xd9   :  { %3627 = vmatpush3.bf16.msra.mxu0 %v3973_v14  ;;  %v4013_v14 = vld [vmem:[#allocation2 + $0x718] sm:$0xff]  }
  0xda   :  { %3649 = vmatpush3.bf16.msra.mxu1 %v3974_v15  ;;  %3628 = vmatprep.subr.bf16.mxu0 %v3975_v16  ;;  %v4014_v15 = vld [vmem:[#allocation2 + $0x798] sm:$0xff]   ;;  %v4015_v16 = vld [vmem:[#allocation2 + $0x760] sm:$0xff]  }
  0xdb   :  { %3650 = vmatprep.subr.bf16.mxu1 %v3976_v17  ;;  %v4016_v17 = vld [vmem:[#allocation2 + $0x7e0] sm:$0xff]  }
  0xdd   :  { %3629 = vmatpush3.bf16.msra.mxu0 %v3977_v18  ;;  %v4017_v18 = vld [vmem:[#allocation2 + $0x720] sm:$0xff]  }
  0xde   :  { %3651 = vmatpush3.bf16.msra.mxu1 %v3978_v19  ;;  %3630 = vmatprep.subr.bf16.mxu0 %v3979_v20  ;;  %v4018_v19 = vld [vmem:[#allocation2 + $0x7a0] sm:$0xff]  }
  0xdf   :  { %3652 = vmatprep.subr.bf16.mxu1 %v3980_v21  ;;  %v3085_v20 = vld [vmem:[%s4411_s2] ss:$0 sm:$0xff] }
  0xe1   :  { %3631 = vmatpush3.bf16.msra.mxu0 %v3981_v22  ;;  %v4019_v22 = vld [vmem:[#allocation2 + $0x768] sm:$0xff]  }
  0xe2   :  { %3653 = vmatpush3.bf16.msra.mxu1 %v3982_v23  ;;  %3632 = vmatprep.subr.bf16.mxu0 %v3983_v24  ;;  %v4020_v24 = vld [vmem:[#allocation2 + $0x7e8] sm:$0xff]  }
  0xe3   :  { %3654 = vmatprep.subr.bf16.mxu1 %v3984_v25 }
  0xe5   :  { %3633 = vmatpush3.bf16.msra.mxu0 %v3985_v26  ;;  %v4021_v26 = vld [vmem:[#allocation2 + $0x728] sm:$0xff]  }
  0xe6   :  { %3655 = vmatpush3.bf16.msra.mxu1 %v3986_v27  ;;  %3634 = vmatprep.subr.bf16.mxu0 %v3987_v28  ;;  %v4022_v28 = vld [vmem:[#allocation2 + $0x7a8] sm:$0xff]  }
  0xe7   :  { %3656 = vmatprep.subr.bf16.mxu1 %v3988_v29  ;;  %v4023_v29 = vld [vmem:[#allocation2 + $0x770] sm:$0xff]  }
  0xe9   :  { %3635 = vmatpush3.bf16.msra.mxu0 %v3989_v30  ;;  %v4024_v30 = vld [vmem:[#allocation2 + $0x7f0] sm:$0xff]  }
  0xea   :  { %3657 = vmatpush3.bf16.msra.mxu1 %v3990_v31  ;;  %3636 = vmatprep.subr.bf16.mxu0 %v3991_v32  ;;  %v4025_v31 = vld [vmem:[#allocation2 + $0x730] sm:$0xff]  }
  0xeb   :  { %3658 = vmatprep.subr.bf16.mxu1 %v3992_v33  ;;  %v4026_v32 = vld [vmem:[#allocation2 + $0x7b0] sm:$0xff]   ;;  %v4027_v33 = vld [vmem:[#allocation2 + $0x778] sm:$0xff]  }
  0xed   :  { %3637 = vmatpush3.bf16.msra.mxu0 %v3993_v34  ;;  %v4028_v34 = vld [vmem:[#allocation2 + $0x7f8] sm:$0xff]  }
  0xee   :  { %3659 = vmatpush3.bf16.msra.mxu1 %v3994_v35  ;;  %3638 = vmatprep.subr.bf16.mxu0 %v3995_v36  ;;  %v4029_v35 = vld [vmem:[#allocation2 + $0x738] sm:$0xff]  }
  0xef   :  { %3660 = vmatprep.subr.bf16.mxu1 %v3996_v37  ;;  %v4030_v36 = vld [vmem:[#allocation2 + $0x7b8] sm:$0xff]   ;;  %v70_v37 = vld [vmem:[%s4409_s0 + $0xe8] sm:$0xff] }
  0xf1   :  { %3639 = vmatpush3.bf16.msra.mxu0 %v3997_v38  ;;  %v102_v38 = vld [vmem:[%s4409_s0 + $0x1e8] sm:$0xff] }
  0xf2   :  { %3661 = vmatpush3.bf16.msra.mxu1 %v3998_v39  ;;  %3668 = vmatprep.subr.bf16.mxu0 %v3999_v52  ;;  %v72_v39 = vld [vmem:[%s4409_s0 + $0xf8] sm:$0xff]  ;;  %v134_v40 = vpack.c.bf16 %v102_v38, %v70_v37  ;;  %v4035_v38 = vld [vmem:[%s4412_s3 + $0x20] sm:$0xff]  }
  0xf3   :  { %3690 = vmatprep.subr.bf16.mxu1 %v4000_v53  ;;  %v136_v44 = vpack.c.bf16 %v104_v41, %v72_v39  ;;  %v4034_v37 = vld [vmem:[%s4412_s3 + $0x18] sm:$0xff]   ;;  %v4036_v39 = vld [vmem:[%s4412_s3 + $0x28] sm:$0xff]  }
  0xf4   :  { %2717 = vmatmul.mubr.bf16.vlgmr.msra.gmra.mrb[24].mxu0 %v129_v48  ;;  %v135_v48 = vpack.c.bf16 %v103_v47, %v71_v46  ;;  %v4038_v41 = vld [vmem:[%s4412_s3 + $0x38] sm:$0xff]   ;;  %v4040_v46 = vld [vmem:[%s4414_s5 + $0x8] sm:$0xff]  }
  0xf5   :  { %2758 = vmatmul.mubr.bf16.vlgmr.msra.gmra.mrb[24].mxu1 %v131_v51  ;;  %3669 = vmatpush3.bf16.msra.mxu0 %v4001_v54 }
  0xf6   :  { %3691 = vmatpush3.bf16.msra.mxu1 %v4002_v55  ;;  %3670 = vmatprep.subr.bf16.mxu0 %v4003_v56 }
  0xf7   :  { %3692 = vmatprep.subr.bf16.mxu1 %v4004_v58  ;;  %2798 = vmatprep.mubr.bf16.mxu0 %v134_v40  ;;  %v4037_v40 = vld [vmem:[%s4412_s3 + $0x30] sm:$0xff]  }
  0xf8   :  { %2839 = vmatprep.mubr.bf16.mxu1 %v136_v44 }
  0xf9   :  { %3671 = vmatpush3.bf16.msra.mxu0 %v4005_v60 }
  0xfa   :  { %3693 = vmatpush3.bf16.msra.mxu1 %v4006_v62  ;;  %3672 = vmatprep.subr.bf16.mxu0 %v4007_v1 }
  0xfb   :  { %3694 = vmatprep.subr.bf16.mxu1 %v4008_v4 }
  0xfd   :  { %3673 = vmatpush3.bf16.msra.mxu0 %v4009_v6 }
  0xfe   :  { %3695 = vmatpush3.bf16.msra.mxu1 %v4010_v8  ;;  %3674 = vmatprep.subr.bf16.mxu0 %v4011_v11 }
  0xff   :  { %3696 = vmatprep.subr.bf16.mxu1 %v4012_v13 }
 0x101   :  { %3675 = vmatpush3.bf16.msra.mxu0 %v4013_v14 }
 0x102   :  { %3697 = vmatpush3.bf16.msra.mxu1 %v4014_v15  ;;  %3676 = vmatprep.subr.bf16.mxu0 %v4015_v16 }
 0x103   :  { %3698 = vmatprep.subr.bf16.mxu1 %v4016_v17  ;;  %v4031_v17 = vld [vmem:[%s4412_s3] sm:$0xff]  }
 0x105   :  { %3677 = vmatpush3.bf16.msra.mxu0 %v4017_v18  ;;  %v4082_v18 = vmov 0.0  }
 0x106   :  { %3699 = vmatpush3.bf16.msra.mxu1 %v4018_v19  ;;  %3678 = vmatprep.subr.bf16.mxu0 %v4019_v22  ;;  %v4032_v19 = vld [vmem:[%s4412_s3 + $0x8] sm:$0xff]  }
 0x107   :  { %v3376_v57 = vpop.f32.mrb[0].mxu0  ;;  %3700 = vmatprep.subr.bf16.mxu1 %v4020_v24 }
 0x108   :  { %v3398_v59 = vpop.f32.mrb[0].mxu1  ;;  %v3377_v61 = vpop.f32.mrb[1].mxu0 }
 0x109   :  { %v3378_v63 = vadd.f32 %v3377_v61, %v3376_v57  ;;  %v3399_v0 = vpop.f32.mrb[1].mxu1  ;;  %v3379_v3 = vpop.f32.mrb[2].mxu0  ;;  %3679 = vmatpush3.bf16.msra.mxu0 %v4021_v26 }
 0x10a   :  { %v3400_v2 = vadd.f32 %v3399_v0, %v3398_v59  ;;  %v3401_v5 = vpop.f32.mrb[2].mxu1  ;;  %v3380_v7 = vpop.f32.mrb[3].mxu0  ;;  %3701 = vmatpush3.bf16.msra.mxu1 %v4022_v28  ;;  %3680 = vmatprep.subr.bf16.mxu0 %v4023_v29 }
 0x10b   :  { %v3381_v9 = vadd.f32 %v3380_v7, %v3379_v3  ;;  %v3402_v10 = vpop.f32.mrb[3].mxu1  ;;  %v2227_v21 = vadd.f32 %v3378_v63, %v3085_v20  ;;  %3702 = vmatprep.subr.bf16.mxu1 %v4024_v30 }
 0x10c   :  { %v3403_v12 = vadd.f32 %v3402_v10, %v3401_v5 }
 0x10d   :  { %v2230_v23 = vadd.f32 %v3381_v9, %v3085_v20  ;;  %v2268_v25 = vadd.f32 %v3400_v2, %v2227_v21  ;;  %3681 = vmatpush3.bf16.msra.mxu0 %v4025_v31 }
 0x10e   :  { %3703 = vmatpush3.bf16.msra.mxu1 %v4026_v32  ;;  %3682 = vmatprep.subr.bf16.mxu0 %v4027_v33 }
 0x10f   :  { %v2271_v27 = vadd.f32 %v3403_v12, %v2230_v23  ;;  %3704 = vmatprep.subr.bf16.mxu1 %v4028_v34 }
 0x111   :  { %3683 = vmatpush3.bf16.msra.mxu0 %v4029_v35 }
 0x112   :  { %3705 = vmatpush3.bf16.msra.mxu1 %v4030_v36  ;;  %3730 = vmatprep.subr.bf16.mxu0 %v4082_v18  ;;  %v4033_v36 = vld [vmem:[%s4412_s3 + $0x10] sm:$0xff]  }
 0x113   :  { %3750 = vmatprep.subr.bf16.mxu1 %v4082_v18 }
 0x114   :  { %2799 = vmatmul.mubr.bf16.vlgmr.msra.gmra.mrb[28].mxu0 %v133_v45 }
 0x115   :  { %2840 = vmatmul.mubr.bf16.vlgmr.msra.gmra.mrb[28].mxu1 %v135_v48  ;;  %3731 = vmatpush3.bf16.msra.mxu0 %v4031_v17 }
 0x116   :  { %3732 = vmatprep.subr.bf16.mxu0 %v4082_v18  ;;  %3746 = vmatprep.mubr.msk.bf16.mxu0 %vm4083_vm0, %v4082_v18 }
 0x117   :  { %3766 = vmatprep.mubr.msk.bf16.mxu1 %vm4083_vm0, %v4082_v18  ;;  %3751 = vmatpush3.bf16.msra.mxu1 %v4039_v42 }
 0x118   :  { %3752 = vmatprep.subr.bf16.mxu1 %v4082_v18 }
 0x119   :  { %3733 = vmatpush3.bf16.msra.mxu0 %v4032_v19 }
 0x11a   :  { %3734 = vmatprep.subr.bf16.mxu0 %v4082_v18 }
 0x11b   :  { %3753 = vmatpush3.bf16.msra.mxu1 %v4040_v46 }
 0x11c   :  { %3754 = vmatprep.subr.bf16.mxu1 %v4082_v18 }
 0x11d   :  { %3735 = vmatpush3.bf16.msra.mxu0 %v4033_v36 }
 0x11e   :  { %3736 = vmatprep.subr.bf16.mxu0 %v4082_v18 }
 0x121   :  { %3737 = vmatpush3.bf16.msra.mxu0 %v4034_v37 }
 0x122   :  { %3738 = vmatprep.subr.bf16.mxu0 %v4082_v18 }
 0x125   :  { %3739 = vmatpush3.bf16.msra.mxu0 %v4035_v38 }
 0x126   :  { %3740 = vmatprep.subr.bf16.mxu0 %v4082_v18 }
 0x127   :  { %v3420_v49 = vpop.f32.mrb[4].mxu0 }
 0x128   :  { %v3442_v50 = vpop.f32.mrb[4].mxu1  ;;  %v3421_v51 = vpop.f32.mrb[5].mxu0 }
 0x129   :  { %v3422_v52 = vadd.f32 %v3421_v51, %v3420_v49  ;;  %v3443_v53 = vpop.f32.mrb[5].mxu1  ;;  %v3423_v54 = vpop.f32.mrb[6].mxu0  ;;  %3741 = vmatpush3.bf16.msra.mxu0 %v4036_v39 }
 0x12a   :  { %v3444_v55 = vadd.f32 %v3443_v53, %v3442_v50  ;;  %v3445_v56 = vpop.f32.mrb[6].mxu1  ;;  %v3424_v57 = vpop.f32.mrb[7].mxu0  ;;  %3742 = vmatprep.subr.bf16.mxu0 %v4082_v18 }
 0x12b   :  { %v2309_v58 = vadd.f32 %v3422_v52, %v2268_v25  ;;  %v3425_v59 = vadd.f32 %v3424_v57, %v3423_v54  ;;  %v3446_v60 = vpop.f32.mrb[7].mxu1  ;;  %v4041_v57 = vld [vmem:[%s4414_s5 + $0x10] sm:$0xff]  }
 0x12c   :  { %v3447_v61 = vadd.f32 %v3446_v60, %v3445_v56  ;;  %3755 = vmatpush3.bf16.msra.mxu1 %v4041_v57 }
 0x12d   :  { %v2350_v62 = vadd.f32 %v3444_v55, %v2309_v58  ;;  %v2312_v63 = vadd.f32 %v3425_v59, %v2271_v27  ;;  %3743 = vmatpush3.bf16.msra.mxu0 %v4037_v40  ;;  %3756 = vmatprep.subr.bf16.mxu1 %v4082_v18 }
 0x12e   :  { %3744 = vmatprep.subr.bf16.mxu0 %v4082_v18 }
 0x12f   :  { %v2353_v0 = vadd.f32 %v3447_v61, %v2312_v63  ;;  %v4042_v61 = vld [vmem:[%s4414_s5 + $0x18] sm:$0xff]  }
 0x130   :  { %3757 = vmatpush3.bf16.msra.mxu1 %v4042_v61 }
 0x131   :  { %3745 = vmatpush3.bf16.msra.mxu0 %v4038_v41  ;;  %3758 = vmatprep.subr.bf16.mxu1 %v4082_v18 }
 0x147   :  { %v3464_v1 = vpop.f32.mrb[8].mxu0 }
 0x148   :  { %v3486_v2 = vpop.f32.mrb[8].mxu1  ;;  %v3465_v3 = vpop.f32.mrb[9].mxu0 }
 0x149   :  { %v3487_v4 = vpop.f32.mrb[9].mxu1  ;;  %v3466_v5 = vadd.f32 %v3465_v3, %v3464_v1  ;;  %v3467_v7 = vpop.f32.mrb[10].mxu0 }
 0x14a   :  { %v3488_v6 = vadd.f32 %v3487_v4, %v3486_v2  ;;  %v3489_v8 = vpop.f32.mrb[10].mxu1  ;;  %v3468_v9 = vpop.f32.mrb[11].mxu0 }
 0x14b   :  { %v3490_v10 = vpop.f32.mrb[11].mxu1  ;;  %v2391_v11 = vadd.f32 %v3466_v5, %v2350_v62  ;;  %v3469_v12 = vadd.f32 %v3468_v9, %v3467_v7 }
 0x14c   :  { %v3491_v13 = vadd.f32 %v3490_v10, %v3489_v8 }
 0x14d   :  { %v2432_v14 = vadd.f32 %v3488_v6, %v2391_v11  ;;  %v2394_v15 = vadd.f32 %v3469_v12, %v2353_v0 }
 0x14f   :  { %v2435_v16 = vadd.f32 %v3491_v13, %v2394_v15 }
 0x167   :  { %v3508_v20 = vpop.f32.mrb[12].mxu0 }
 0x168   :  { %v3530_v21 = vpop.f32.mrb[12].mxu1  ;;  %v3509_v22 = vpop.f32.mrb[13].mxu0 }
 0x169   :  { %v3510_v23 = vadd.f32 %v3509_v22, %v3508_v20  ;;  %v3531_v24 = vpop.f32.mrb[13].mxu1  ;;  %v3511_v25 = vpop.f32.mrb[14].mxu0 }
 0x16a   :  { %v3532_v26 = vadd.f32 %v3531_v24, %v3530_v21  ;;  %v3533_v27 = vpop.f32.mrb[14].mxu1  ;;  %v3512_v28 = vpop.f32.mrb[15].mxu0 }
 0x16b   :  { %v2473_v29 = vadd.f32 %v3510_v23, %v2432_v14  ;;  %v3513_v30 = vadd.f32 %v3512_v28, %v3511_v25  ;;  %v3534_v31 = vpop.f32.mrb[15].mxu1 }
 0x16c   :  { %v3535_v32 = vadd.f32 %v3534_v31, %v3533_v27 }
 0x16d   :  { %v2514_v33 = vadd.f32 %v3532_v26, %v2473_v29  ;;  %v2476_v34 = vadd.f32 %v3513_v30, %v2435_v16 }
 0x16f   :  { %v2517_v35 = vadd.f32 %v3535_v32, %v2476_v34 }
 0x187   :  { %v3552_v43 = vpop.f32.mrb[16].mxu0 }
 0x188   :  { %v3574_v44 = vpop.f32.mrb[16].mxu1  ;;  %v3553_v45 = vpop.f32.mrb[17].mxu0 }
 0x189   :  { %v3554_v47 = vadd.f32 %v3553_v45, %v3552_v43  ;;  %v3575_v48 = vpop.f32.mrb[17].mxu1  ;;  %v3555_v49 = vpop.f32.mrb[18].mxu0 }
 0x18a   :  { %v3576_v50 = vadd.f32 %v3575_v48, %v3574_v44  ;;  %v3577_v51 = vpop.f32.mrb[18].mxu1  ;;  %v3556_v52 = vpop.f32.mrb[19].mxu0 }
 0x18b   :  { %v2555_v53 = vadd.f32 %v3554_v47, %v2514_v33  ;;  %v3557_v54 = vadd.f32 %v3556_v52, %v3555_v49  ;;  %v3578_v55 = vpop.f32.mrb[19].mxu1  ;;  %v4045_v52 = vld [vmem:[%s4414_s5 + $0x30] sm:$0xff]  }
 0x18c   :  { %v3579_v56 = vadd.f32 %v3578_v55, %v3577_v51  ;;  %v4044_v51 = vld [vmem:[%s4414_s5 + $0x28] sm:$0xff]  }
 0x18d   :  { %v2596_v58 = vadd.f32 %v3576_v50, %v2555_v53  ;;  %v2558_v59 = vadd.f32 %v3557_v54, %v2517_v35  ;;  %v4043_v50 = vld [vmem:[%s4414_s5 + $0x20] sm:$0xff]   ;;  %v4046_v53 = vld [vmem:[%s4414_s5 + $0x38] sm:$0xff]  }
 0x18e   :  { %3759 = vmatpush3.bf16.msra.mxu1 %v4043_v50  ;;  %v3342_v54 = vld [vmem:[%s4413_s4] ss:$0 sm:$0xff] }
 0x18f   :  { %v2599_v60 = vadd.f32 %v3579_v56, %v2558_v59  ;;  %3760 = vmatprep.subr.bf16.mxu1 %v4082_v18 }
 0x192   :  { %3761 = vmatpush3.bf16.msra.mxu1 %v4044_v51 }
 0x193   :  { %3762 = vmatprep.subr.bf16.mxu1 %v4082_v18 }
 0x196   :  { %3763 = vmatpush3.bf16.msra.mxu1 %v4045_v52 }
 0x197   :  { %3764 = vmatprep.subr.bf16.mxu1 %v4082_v18  ;;  %v3351_v18 = vld [vmem:[%s4415_s6] ss:$0 sm:$0xff] }
 0x19a   :  { %3765 = vmatpush3.bf16.msra.mxu1 %v4046_v53 }
 0x1a7   :  { %v3596_v62 = vpop.f32.mrb[20].mxu0 }
 0x1a8   :  { %v3618_v63 = vpop.f32.mrb[20].mxu1  ;;  %v3597_v0 = vpop.f32.mrb[21].mxu0 }
 0x1a9   :  { %v3619_v1 = vpop.f32.mrb[21].mxu1  ;;  %v3598_v2 = vadd.f32 %v3597_v0, %v3596_v62  ;;  %v3599_v4 = vpop.f32.mrb[22].mxu0 }
 0x1aa   :  { %v3620_v3 = vadd.f32 %v3619_v1, %v3618_v63  ;;  %v3621_v5 = vpop.f32.mrb[22].mxu1  ;;  %v3600_v6 = vpop.f32.mrb[23].mxu0 }
 0x1ab   :  { %v3622_v7 = vpop.f32.mrb[23].mxu1  ;;  %v2637_v8 = vadd.f32 %v3598_v2, %v2596_v58  ;;  %v3601_v9 = vadd.f32 %v3600_v6, %v3599_v4 }
 0x1ac   :  { %v3623_v10 = vadd.f32 %v3622_v7, %v3621_v5 }
 0x1ad   :  { %v2678_v11 = vadd.f32 %v3620_v3, %v2637_v8  ;;  %v2640_v12 = vadd.f32 %v3601_v9, %v2599_v60 }
 0x1af   :  { %v2681_v13 = vadd.f32 %v3623_v10, %v2640_v12 }
 0x1c7   :  { %v3640_v14 = vpop.f32.mrb[24].mxu0 }
 0x1c8   :  { %v3662_v15 = vpop.f32.mrb[24].mxu1  ;;  %v3641_v16 = vpop.f32.mrb[25].mxu0 }
 0x1c9   :  { %v3642_v17 = vadd.f32 %v3641_v16, %v3640_v14  ;;  %v3663_v19 = vpop.f32.mrb[25].mxu1  ;;  %v3643_v20 = vpop.f32.mrb[26].mxu0 }
 0x1ca   :  { %v3664_v21 = vadd.f32 %v3663_v19, %v3662_v15  ;;  %v3665_v22 = vpop.f32.mrb[26].mxu1  ;;  %v3644_v23 = vpop.f32.mrb[27].mxu0 }
 0x1cb   :  { %v2719_v24 = vadd.f32 %v3642_v17, %v2678_v11  ;;  %v3645_v25 = vadd.f32 %v3644_v23, %v3643_v20  ;;  %v3666_v26 = vpop.f32.mrb[27].mxu1 }
 0x1cc   :  { %v3667_v27 = vadd.f32 %v3666_v26, %v3665_v22 }
 0x1cd   :  { %v2760_v28 = vadd.f32 %v3664_v21, %v2719_v24  ;;  %v2722_v29 = vadd.f32 %v3645_v25, %v2681_v13 }
 0x1cf   :  { %v2763_v30 = vadd.f32 %v3667_v27, %v2722_v29 }
 0x1e7   :  { %v3684_v31 = vpop.f32.mrb[28].mxu0 }
 0x1e8   :  { %v3706_v32 = vpop.f32.mrb[28].mxu1  ;;  %v3685_v33 = vpop.f32.mrb[29].mxu0 }
 0x1e9   :  { %v3686_v34 = vadd.f32 %v3685_v33, %v3684_v31  ;;  %v3707_v35 = vpop.f32.mrb[29].mxu1  ;;  %v3687_v36 = vpop.f32.mrb[30].mxu0 }
 0x1ea   :  { %v3708_v37 = vadd.f32 %v3707_v35, %v3706_v32  ;;  %v3709_v38 = vpop.f32.mrb[30].mxu1  ;;  %v3688_v39 = vpop.f32.mrb[31].mxu0 }
 0x1eb   :  { %v2801_v40 = vadd.f32 %v3686_v34, %v2760_v28  ;;  %v3689_v41 = vadd.f32 %v3688_v39, %v3687_v36  ;;  %v3710_v42 = vpop.f32.mrb[31].mxu1 }
 0x1ec   :  { %v3711_v43 = vadd.f32 %v3710_v42, %v3709_v38 }
 0x1ed   :  { %v2842_v44 = vadd.f32 %v3708_v37, %v2801_v40  ;;  %v2804_v45 = vadd.f32 %v3689_v41, %v2763_v30 }
 0x1ef   :  { %v2845_v46 = vadd.f32 %v3711_v43, %v2804_v45  ;;  %4047 = vtanh.f32 %v2842_v44 }
 0x1f1   :  { %4049 = vtanh.f32 %v2845_v46 }
 0x1f9   :  { %v4048_v47 = vpop.eup %4047 }
 0x1fb   :  { %v4050_v48 = vpop.eup %4049 }
 0x1fc   :  { %v2850_v49 = vpack.c.bf16 %v4050_v48, %v4048_v47 }
 0x1fe   :  { %3747 = vmatmul.mubr.bf16.vlgmr.msra.gmra.mrb[32].mxu0 %v2850_v49 }
 0x2d1   :  { %v2956_v55 = vpop.f32.mrb[32].mxu0 }
 0x2d2   :  { %v2957_v56 = vadd.f32 %v3342_v54, %v2956_v55  ;;  %v3748_v57 = vpop.f32.mrb[33].mxu0 }
 0x2d3   :  { %v2959_v58 = vpop.f32.mrb[34].mxu0 }
 0x2d4   :  { %v2960_v59 = vadd.f32 %v3342_v54, %v2959_v58  ;;  %v3749_v60 = vpop.f32.mrb[35].mxu0  ;;  %4051 = vtanh.f32 %v2957_v56 }
 0x2d6   :  { %4053 = vtanh.f32 %v2960_v59 }
 0x2de   :  { %v4052_v61 = vpop.eup %4051 }
 0x2e0   :  { %v4054_v62 = vpop.eup %4053 }
 0x2e1   :  { %v2965_v63 = vpack.c.bf16 %v4054_v62, %v4052_v61 }
 0x2e3   :  { %3767 = vmatmul.mubr.bf16.vlgmr.msra.gmra.mrb[32].mxu1 %v2965_v63 }
 0x3b6   :  { %v3071_v0 = vpop.f32.mrb[32].mxu1 }
 0x3b7   :  { %v3072_v1 = vadd.f32 %v3351_v18, %v3071_v0  ;;  %v3768_v2 = vpop.f32.mrb[33].mxu1 }
 0x3b8   :  { %v3074_v3 = vpop.f32.mrb[34].mxu1 }
 0x3b9   :  { %3078 = vst [vmem:[%s4416_s7] sm:$0xff] %v3072_v1  ;;  %v3075_v4 = vadd.f32 %v3351_v18, %v3074_v3  ;;  %v3769_v5 = vpop.f32.mrb[35].mxu1 }
 0x3bb   :  { %3079 = vst [vmem:[%s4416_s7 + $0x8] sm:$0xff] %v3075_v4 }
 0x3bc   :  { %3084 = vsyncpa [#allocation3], 1 }

</bundles_post_ra>
